<compile_context>
chip_gen: v7x
topology: tpu7x:2x2x1
jax: 0.10.0
libtpu: 0.0.40
codegen_flags: <defaults>
</compile_context>

<pallas_src>
import functools
import math

import jax
import jax.numpy as jnp
from jax.experimental import pallas as pl
from jax.experimental.pallas import tpu as pltpu

# ----------------------------------------------------------------------------
# Small synthetic GPT-2 config (real model: d=768, 12 heads, 12 layers,
# vocab=21128 for lm_head -- shrunk here per instructions).
# ----------------------------------------------------------------------------
D_MODEL = 64
N_HEAD = 4
HEAD_DIM = D_MODEL // N_HEAD
D_FF = 4 * D_MODEL
N_LAYER = 2
VOCAB = 512          # stands in for 21128
VALUE_PAD = 128      # value head column block, padded to a full lane group
MAX_POS = 64
LN_EPS = 1e-5

PARAM_DTYPE = jnp.bfloat16   # MXU-native, halves HBM traffic for weights
ACT_DTYPE = jnp.bfloat16     # residual stream / activations


# ----------------------------------------------------------------------------
# Tile selection helper (prefer large tiles, fall back to the full dim when the
# array is small or does not divide evenly -> always satisfies the (8,128)
# BlockSpec divisibility-or-full-extent rule for the shapes used here).
# ----------------------------------------------------------------------------
def _pick_tile(dim, prefs):
    for p in prefs:
        if dim >= p and dim % p == 0:
            return p
    return dim


# ----------------------------------------------------------------------------
# Fused (LayerNorm?) -> matmul -> bias -> (GELU?) -> (+residual?) kernel.
# ----------------------------------------------------------------------------
def _fused_linear_kernel(*refs, activation, use_ln, add_residual):
    idx = 0
    x_ref = refs[idx]; idx += 1
    if use_ln:
        g_ref = refs[idx]
        bln_ref = refs[idx + 1]
        idx += 2
    w_ref = refs[idx]; idx += 1
    b_ref = refs[idx]; idx += 1
    if add_residual:
        r_ref = refs[idx]; idx += 1
    o_ref = refs[idx]

    x = x_ref[...]
    if use_ln:
        xf = x.astype(jnp.float32)
        mu = jnp.mean(xf, axis=-1, keepdims=True)
        var = jnp.mean(jnp.square(xf - mu), axis=-1, keepdims=True)
        xf = (xf - mu) * jax.lax.rsqrt(var + LN_EPS)
        xf = xf * g_ref[...].astype(jnp.float32) + bln_ref[...].astype(jnp.float32)
        x = xf.astype(jnp.bfloat16)          # bf16 operand for the MXU

    acc = jnp.dot(x, w_ref[...], preferred_element_type=jnp.float32)
    acc = acc + b_ref[...].astype(jnp.float32)

    if activation == "gelu":                 # GPT-2 tanh-approx GELU (f32 VPU/EUP)
        acc = 0.5 * acc * (1.0 + jnp.tanh(
            0.7978845608028654 * (acc + 0.044715 * acc * acc * acc)))

    if add_residual:
        acc = acc + r_ref[...].astype(jnp.float32)

    o_ref[...] = acc.astype(o_ref.dtype)


def fused_linear(x, w, b, *, ln_g=None, ln_b=None, residual=None,
                 activation="none", out_dtype=None):
    """o = act(LN?(x) @ w + b) (+ residual?); x:[M,K] bf16, w:[K,N] bf16."""
    M, K = x.shape
    N = w.shape[1]
    out_dtype = out_dtype or x.dtype
    use_ln = ln_g is not None
    add_res = residual is not None

    TM = _pick_tile(M, (256, 128, 64, 32, 16, 8))
    TN = _pick_tile(N, (512, 256, 128))
    grid = (M // TM, N // TN)

    in_specs = [pl.BlockSpec((TM, K), lambda i, j: (i, 0))]
    inputs = [x]
    if use_ln:
        in_specs += [pl.BlockSpec((1, K), lambda i, j: (0, 0)),
                     pl.BlockSpec((1, K), lambda i, j: (0, 0))]
        inputs += [ln_g.reshape(1, K), ln_b.reshape(1, K)]
    in_specs += [pl.BlockSpec((K, TN), lambda i, j: (0, j)),
                 pl.BlockSpec((1, TN), lambda i, j: (0, j))]
    inputs += [w, b.reshape(1, N)]
    if add_res:
        in_specs += [pl.BlockSpec((TM, TN), lambda i, j: (i, j))]
        inputs += [residual]

    kernel = functools.partial(_fused_linear_kernel, activation=activation,
                               use_ln=use_ln, add_residual=add_res)
    return pl.pallas_call(
        kernel,
        out_shape=jax.ShapeDtypeStruct((M, N), out_dtype),
        grid=grid,
        in_specs=in_specs,
        out_specs=pl.BlockSpec((TM, TN), lambda i, j: (i, j)),
        compiler_params=pltpu.CompilerParams(
            dimension_semantics=("parallel", "parallel"),
            vmem_limit_bytes=32 * 1024 * 1024),
    )(*inputs)


# ----------------------------------------------------------------------------
# Causal self-attention: all heads of one batch element per grid step,
# operating directly on the [T, 3*D] qkv slab (no HBM transpose round-trips).
# TODO(synk): for real sequence lengths (T ~ 1024+) this should become a
# flash-style online-softmax kernel with a KV grid axis instead of
# materializing the full TxT score matrix per head.
# ----------------------------------------------------------------------------
def _attn_kernel(qkv_ref, o_ref, *, n_head, head_dim, scale):
    qkv = qkv_ref[0]                                   # (T, 3D) bf16
    T = qkv.shape[0]
    D = n_head * head_dim

    row = jax.lax.broadcasted_iota(jnp.int32, (T, T), 0)
    col = jax.lax.broadcasted_iota(jnp.int32, (T, T), 1)
    causal = col <= row

    outs = []
    for h in range(n_head):                            # static, unrolled
        qh = qkv[:, h * head_dim:(h + 1) * head_dim]
        kh = qkv[:, D + h * head_dim:D + (h + 1) * head_dim]
        vh = qkv[:, 2 * D + h * head_dim:2 * D + (h + 1) * head_dim]
        # q @ k^T via dot_general (contract feature dim; no explicit transpose)
        s = jax.lax.dot_general(
            qh, kh, (((1,), (1,)), ((), ())),
            preferred_element_type=jnp.float32) * scale
        s = jnp.where(causal, s, jnp.float32(-1e30))   # causal mask
        s = s - jnp.max(s, axis=-1, keepdims=True)
        p = jnp.exp(s)
        p = p * pl.reciprocal(jnp.sum(p, axis=-1, keepdims=True), approx=True)
        oh = jnp.dot(p.astype(jnp.bfloat16), vh,
                     preferred_element_type=jnp.float32)
        outs.append(oh)
    # single lane-dense store of the full (T, D) output slab
    o_ref[0] = jnp.concatenate(outs, axis=-1).astype(o_ref.dtype)


def causal_self_attention(qkv, B, T):
    """qkv: [B*T, 3D] -> attention output [B*T, D]."""
    qkv3 = qkv.reshape(B, T, 3 * D_MODEL)
    kernel = functools.partial(_attn_kernel, n_head=N_HEAD, head_dim=HEAD_DIM,
                               scale=1.0 / math.sqrt(HEAD_DIM))
    out = pl.pallas_call(
        kernel,
        out_shape=jax.ShapeDtypeStruct((B, T, D_MODEL), qkv.dtype),
        grid=(B,),
        in_specs=[pl.BlockSpec((1, T, 3 * D_MODEL), lambda b: (b, 0, 0))],
        out_specs=pl.BlockSpec((1, T, D_MODEL), lambda b: (b, 0, 0)),
        compiler_params=pltpu.CompilerParams(
            dimension_semantics=("parallel",),
            vmem_limit_bytes=32 * 1024 * 1024),
    )(qkv3)
    return out.reshape(B * T, D_MODEL)


# ----------------------------------------------------------------------------
# Parameter initialization (deterministic, synthetic).
# value head is folded into the lm_head weight as a 128-padded column block.
# ----------------------------------------------------------------------------
def init_params(key):
    keys = jax.random.split(key, 4 + N_LAYER)

    def nrm(k, shape, std=0.02):
        return std * jax.random.normal(k, shape, dtype=jnp.float32)

    params = {
        "wte": nrm(keys[0], (VOCAB, D_MODEL)).astype(PARAM_DTYPE),
        "wpe": nrm(keys[1], (MAX_POS, D_MODEL)).astype(PARAM_DTYPE),
        "ln_f_g": jnp.ones((D_MODEL,), jnp.float32),
        "ln_f_b": jnp.zeros((D_MODEL,), jnp.float32),
    }

    # lm_head: Linear(768, 21128, bias=False); value_layer: Linear(768, 1)+ReLU
    lm_head_w = nrm(keys[2], (D_MODEL, VOCAB))
    value_w = nrm(keys[3], (D_MODEL, 1))
    value_b = jnp.zeros((), jnp.float32)
    value_w_pad = jnp.zeros((D_MODEL, VALUE_PAD), jnp.float32)
    value_w_pad = value_w_pad.at[:, 0].set(value_w[:, 0])
    params["head_w"] = jnp.concatenate(
        [lm_head_w, value_w_pad], axis=1).astype(PARAM_DTYPE)   # [D, VOCAB+128]
    params["head_b"] = jnp.zeros((VOCAB + VALUE_PAD,),
                                 jnp.float32).at[VOCAB].set(value_b)

    params["layers"] = []
    for l in range(N_LAYER):
        lk = jax.random.split(keys[4 + l], 4)
        params["layers"].append(dict(
            ln1_g=jnp.ones((D_MODEL,), jnp.float32),
            ln1_b=jnp.zeros((D_MODEL,), jnp.float32),
            w_qkv=nrm(lk[0], (D_MODEL, 3 * D_MODEL)).astype(PARAM_DTYPE),
            b_qkv=jnp.zeros((3 * D_MODEL,), jnp.float32),
            w_proj=nrm(lk[1], (D_MODEL, D_MODEL)).astype(PARAM_DTYPE),
            b_proj=jnp.zeros((D_MODEL,), jnp.float32),
            ln2_g=jnp.ones((D_MODEL,), jnp.float32),
            ln2_b=jnp.zeros((D_MODEL,), jnp.float32),
            w_fc=nrm(lk[2], (D_MODEL, D_FF)).astype(PARAM_DTYPE),
            b_fc=jnp.zeros((D_FF,), jnp.float32),
            w_fc2=nrm(lk[3], (D_FF, D_MODEL)).astype(PARAM_DTYPE),
            b_fc2=jnp.zeros((D_MODEL,), jnp.float32),
        ))
    return params


# ----------------------------------------------------------------------------
# Forward pass matching GPT_2.forward (use_RLHF=True -> returns (logits, value))
# ----------------------------------------------------------------------------
def gpt2_forward(params, input_tokens):
    B, T = input_tokens.shape
    assert T <= MAX_POS, "sequence longer than positional table"

    # Embedding lookup (glue): wte[tokens] + wpe[positions]
    x = jnp.take(params["wte"], input_tokens, axis=0) + params["wpe"][:T][None, :, :]
    x = x.astype(ACT_DTYPE).reshape(B * T, D_MODEL)
    # TODO(synk): nn.Dropout(p=0.1) on the embedding and inside value_layer is
    # treated as identity (inference/eval semantics, no random masking).

    for lp in params["layers"]:
        # --- attention block: LN1 fused into QKV matmul, residual fused into proj
        qkv = fused_linear(x, lp["w_qkv"], lp["b_qkv"],
                           ln_g=lp["ln1_g"], ln_b=lp["ln1_b"])      # [B*T, 3D]
        a = causal_self_attention(qkv, B, T)                         # [B*T, D]
        x = fused_linear(a, lp["w_proj"], lp["b_proj"], residual=x)

        # --- MLP block: LN2 fused into FC1 (+GELU), residual fused into FC2
        h = fused_linear(x, lp["w_fc"], lp["b_fc"],
                         ln_g=lp["ln2_g"], ln_b=lp["ln2_b"],
                         activation="gelu")
        x = fused_linear(h, lp["w_fc2"], lp["b_fc2"], residual=x)

    # Final LN fused into the combined [lm_head | value] matmul; the vocab axis
    # is tiled (streamed weight tiles); value column ReLU'd below in glue.
    out = fused_linear(x, params["head_w"], params["head_b"],
                       ln_g=params["ln_f_g"], ln_b=params["ln_f_b"],
                       out_dtype=jnp.float32)                        # [B*T, VOCAB+128]

    logits = out[:, :VOCAB].reshape(B, T, VOCAB)
    value = jnp.maximum(out[:, VOCAB], 0.0).reshape(B, T)   # ReLU + squeeze(-1)
    return logits, value


if __name__ == "__main__":
    key = jax.random.PRNGKey(0)
    pkey, tkey = jax.random.split(key)
    params = init_params(pkey)
    input_tokens = jax.random.randint(tkey, (2, 8), 0, VOCAB, dtype=jnp.int32)

    logits, value = jax.jit(gpt2_forward)(params, input_tokens)
    jax.block_until_ready((logits, value))

    assert logits.shape == (2, 8, VOCAB), logits.shape
    assert value.shape == (2, 8), value.shape
    assert jnp.all(jnp.isfinite(logits)) and jnp.all(jnp.isfinite(value))
    assert jnp.all(value >= 0.0)  # ReLU on value head
    print("KERNEL_OK")
</pallas_src>

<mosaic_0001>
module attributes {stable_mosaic.version = 11 : i64} {
  func.func @_attn_kernel(%arg0: i32, %arg1: memref<1x8x192xbf16, #tpu.memory_space<vmem>>, %arg2: memref<1x8x64xbf16, #tpu.memory_space<vmem>>) attributes {dimension_semantics = [#tpu.dimension_semantics<parallel>], iteration_bounds = array<i64: 2>, scalar_prefetch = 0 : i64, scratch_operands = 0 : i64, tpu.core_type = #tpu.core_type<tc>, window_params = [{transform_indices = @transform_0, window_bounds = array<i64: 1, 8, 192>}, {transform_indices = @transform_1, window_bounds = array<i64: 1, 8, 64>}]} {
    %c0 = arith.constant 0 : index
    %c0_0 = arith.constant 0 : index
    %c0_1 = arith.constant 0 : index
    %0 = vector.load %arg1[%c0, %c0_0, %c0_1] : memref<1x8x192xbf16, #tpu.memory_space<vmem>>, vector<1x8x192xbf16>
    %1 = vector.shape_cast %0 : vector<1x8x192xbf16> to vector<8x192xbf16>
    %2 = tpu.iota {dimensions = array<i32: 0>} : vector<8x8xi32>
    %3 = tpu.iota {dimensions = array<i32: 1>} : vector<8x8xi32>
    %4 = arith.cmpi sle, %3, %2 : vector<8x8xi32>
    %5 = vector.extract_strided_slice %1 {offsets = [0, 0], sizes = [8, 16], strides = [1, 1]} : vector<8x192xbf16> to vector<8x16xbf16>
    %6 = vector.extract_strided_slice %1 {offsets = [0, 64], sizes = [8, 16], strides = [1, 1]} : vector<8x192xbf16> to vector<8x16xbf16>
    %7 = vector.extract_strided_slice %1 {offsets = [0, 128], sizes = [8, 16], strides = [1, 1]} : vector<8x192xbf16> to vector<8x16xbf16>
    %cst = arith.constant dense<0.000000e+00> : vector<8x8xf32>
    %8 = tpu.matmul %5, %6, %cst {dimension_numbers = #tpu.dot_dimension_numbers<[1], [1], [0], [0], [0, 0, 1, 0], [], []>} : vector<8x16xbf16>, vector<8x16xbf16>, vector<8x8xf32> -> vector<8x8xf32>
    %cst_2 = arith.constant 2.500000e-01 : f32
    %9 = vector.broadcast %cst_2 : f32 to vector<8x8xf32>
    %10 = arith.mulf %8, %9 : vector<8x8xf32>
    %cst_3 = arith.constant -1.000000e+30 : f32
    %11 = vector.broadcast %cst_3 : f32 to vector<8x8xf32>
    %12 = arith.select %4, %10, %11 : vector<8x8xi1>, vector<8x8xf32>
    %cst_4 = arith.constant dense<0xFF800000> : vector<8xf32>
    %13 = vector.multi_reduction <maximumf>, %12, %cst_4 [1] : vector<8x8xf32> to vector<8xf32>
    %14 = vector.shape_cast %13 : vector<8xf32> to vector<8x1xf32>
    %15 = vector.broadcast %14 : vector<8x1xf32> to vector<8x8xf32>
    %16 = arith.subf %12, %15 : vector<8x8xf32>
    %17 = math.exp %16 : vector<8x8xf32>
    %cst_5 = arith.constant dense<0.000000e+00> : vector<8xf32>
    %18 = vector.multi_reduction <add>, %17, %cst_5 [1] : vector<8x8xf32> to vector<8xf32>
    %19 = vector.shape_cast %18 : vector<8xf32> to vector<8x1xf32>
    %20 = tpu.reciprocal %19 {approx = true} : vector<8x1xf32> -> vector<8x1xf32>
    %21 = vector.broadcast %20 : vector<8x1xf32> to vector<8x8xf32>
    %22 = arith.mulf %17, %21 : vector<8x8xf32>
    %23 = arith.truncf %22 : vector<8x8xf32> to vector<8x8xbf16>
    %cst_6 = arith.constant dense<0.000000e+00> : vector<8x16xf32>
    %24 = tpu.matmul %23, %7, %cst_6 {dimension_numbers = #tpu.dot_dimension_numbers<[1], [0], [0], [1], [0, 0, 1, 1], [], []>} : vector<8x8xbf16>, vector<8x16xbf16>, vector<8x16xf32> -> vector<8x16xf32>
    %25 = vector.extract_strided_slice %1 {offsets = [0, 16], sizes = [8, 16], strides = [1, 1]} : vector<8x192xbf16> to vector<8x16xbf16>
    %26 = vector.extract_strided_slice %1 {offsets = [0, 80], sizes = [8, 16], strides = [1, 1]} : vector<8x192xbf16> to vector<8x16xbf16>
    %27 = vector.extract_strided_slice %1 {offsets = [0, 144], sizes = [8, 16], strides = [1, 1]} : vector<8x192xbf16> to vector<8x16xbf16>
    %cst_7 = arith.constant dense<0.000000e+00> : vector<8x8xf32>
    %28 = tpu.matmul %25, %26, %cst_7 {dimension_numbers = #tpu.dot_dimension_numbers<[1], [1], [0], [0], [0, 0, 1, 0], [], []>} : vector<8x16xbf16>, vector<8x16xbf16>, vector<8x8xf32> -> vector<8x8xf32>
    %cst_8 = arith.constant 2.500000e-01 : f32
    %29 = vector.broadcast %cst_8 : f32 to vector<8x8xf32>
    %30 = arith.mulf %28, %29 : vector<8x8xf32>
    %cst_9 = arith.constant -1.000000e+30 : f32
    %31 = vector.broadcast %cst_9 : f32 to vector<8x8xf32>
    %32 = arith.select %4, %30, %31 : vector<8x8xi1>, vector<8x8xf32>
    %cst_10 = arith.constant dense<0xFF800000> : vector<8xf32>
    %33 = vector.multi_reduction <maximumf>, %32, %cst_10 [1] : vector<8x8xf32> to vector<8xf32>
    %34 = vector.shape_cast %33 : vector<8xf32> to vector<8x1xf32>
    %35 = vector.broadcast %34 : vector<8x1xf32> to vector<8x8xf32>
    %36 = arith.subf %32, %35 : vector<8x8xf32>
    %37 = math.exp %36 : vector<8x8xf32>
    %cst_11 = arith.constant dense<0.000000e+00> : vector<8xf32>
    %38 = vector.multi_reduction <add>, %37, %cst_11 [1] : vector<8x8xf32> to vector<8xf32>
    %39 = vector.shape_cast %38 : vector<8xf32> to vector<8x1xf32>
    %40 = tpu.reciprocal %39 {approx = true} : vector<8x1xf32> -> vector<8x1xf32>
    %41 = vector.broadcast %40 : vector<8x1xf32> to vector<8x8xf32>
    %42 = arith.mulf %37, %41 : vector<8x8xf32>
    %43 = arith.truncf %42 : vector<8x8xf32> to vector<8x8xbf16>
    %cst_12 = arith.constant dense<0.000000e+00> : vector<8x16xf32>
    %44 = tpu.matmul %43, %27, %cst_12 {dimension_numbers = #tpu.dot_dimension_numbers<[1], [0], [0], [1], [0, 0, 1, 1], [], []>} : vector<8x8xbf16>, vector<8x16xbf16>, vector<8x16xf32> -> vector<8x16xf32>
    %45 = vector.extract_strided_slice %1 {offsets = [0, 32], sizes = [8, 16], strides = [1, 1]} : vector<8x192xbf16> to vector<8x16xbf16>
    %46 = vector.extract_strided_slice %1 {offsets = [0, 96], sizes = [8, 16], strides = [1, 1]} : vector<8x192xbf16> to vector<8x16xbf16>
    %47 = vector.extract_strided_slice %1 {offsets = [0, 160], sizes = [8, 16], strides = [1, 1]} : vector<8x192xbf16> to vector<8x16xbf16>
    %cst_13 = arith.constant dense<0.000000e+00> : vector<8x8xf32>
    %48 = tpu.matmul %45, %46, %cst_13 {dimension_numbers = #tpu.dot_dimension_numbers<[1], [1], [0], [0], [0, 0, 1, 0], [], []>} : vector<8x16xbf16>, vector<8x16xbf16>, vector<8x8xf32> -> vector<8x8xf32>
    %cst_14 = arith.constant 2.500000e-01 : f32
    %49 = vector.broadcast %cst_14 : f32 to vector<8x8xf32>
    %50 = arith.mulf %48, %49 : vector<8x8xf32>
    %cst_15 = arith.constant -1.000000e+30 : f32
    %51 = vector.broadcast %cst_15 : f32 to vector<8x8xf32>
    %52 = arith.select %4, %50, %51 : vector<8x8xi1>, vector<8x8xf32>
    %cst_16 = arith.constant dense<0xFF800000> : vector<8xf32>
    %53 = vector.multi_reduction <maximumf>, %52, %cst_16 [1] : vector<8x8xf32> to vector<8xf32>
    %54 = vector.shape_cast %53 : vector<8xf32> to vector<8x1xf32>
    %55 = vector.broadcast %54 : vector<8x1xf32> to vector<8x8xf32>
    %56 = arith.subf %52, %55 : vector<8x8xf32>
    %57 = math.exp %56 : vector<8x8xf32>
    %cst_17 = arith.constant dense<0.000000e+00> : vector<8xf32>
    %58 = vector.multi_reduction <add>, %57, %cst_17 [1] : vector<8x8xf32> to vector<8xf32>
    %59 = vector.shape_cast %58 : vector<8xf32> to vector<8x1xf32>
    %60 = tpu.reciprocal %59 {approx = true} : vector<8x1xf32> -> vector<8x1xf32>
    %61 = vector.broadcast %60 : vector<8x1xf32> to vector<8x8xf32>
    %62 = arith.mulf %57, %61 : vector<8x8xf32>
    %63 = arith.truncf %62 : vector<8x8xf32> to vector<8x8xbf16>
    %cst_18 = arith.constant dense<0.000000e+00> : vector<8x16xf32>
    %64 = tpu.matmul %63, %47, %cst_18 {dimension_numbers = #tpu.dot_dimension_numbers<[1], [0], [0], [1], [0, 0, 1, 1], [], []>} : vector<8x8xbf16>, vector<8x16xbf16>, vector<8x16xf32> -> vector<8x16xf32>
    %65 = vector.extract_strided_slice %1 {offsets = [0, 48], sizes = [8, 16], strides = [1, 1]} : vector<8x192xbf16> to vector<8x16xbf16>
    %66 = vector.extract_strided_slice %1 {offsets = [0, 112], sizes = [8, 16], strides = [1, 1]} : vector<8x192xbf16> to vector<8x16xbf16>
    %67 = vector.extract_strided_slice %1 {offsets = [0, 176], sizes = [8, 16], strides = [1, 1]} : vector<8x192xbf16> to vector<8x16xbf16>
    %cst_19 = arith.constant dense<0.000000e+00> : vector<8x8xf32>
    %68 = tpu.matmul %65, %66, %cst_19 {dimension_numbers = #tpu.dot_dimension_numbers<[1], [1], [0], [0], [0, 0, 1, 0], [], []>} : vector<8x16xbf16>, vector<8x16xbf16>, vector<8x8xf32> -> vector<8x8xf32>
    %cst_20 = arith.constant 2.500000e-01 : f32
    %69 = vector.broadcast %cst_20 : f32 to vector<8x8xf32>
    %70 = arith.mulf %68, %69 : vector<8x8xf32>
    %cst_21 = arith.constant -1.000000e+30 : f32
    %71 = vector.broadcast %cst_21 : f32 to vector<8x8xf32>
    %72 = arith.select %4, %70, %71 : vector<8x8xi1>, vector<8x8xf32>
    %cst_22 = arith.constant dense<0xFF800000> : vector<8xf32>
    %73 = vector.multi_reduction <maximumf>, %72, %cst_22 [1] : vector<8x8xf32> to vector<8xf32>
    %74 = vector.shape_cast %73 : vector<8xf32> to vector<8x1xf32>
    %75 = vector.broadcast %74 : vector<8x1xf32> to vector<8x8xf32>
    %76 = arith.subf %72, %75 : vector<8x8xf32>
    %77 = math.exp %76 : vector<8x8xf32>
    %cst_23 = arith.constant dense<0.000000e+00> : vector<8xf32>
    %78 = vector.multi_reduction <add>, %77, %cst_23 [1] : vector<8x8xf32> to vector<8xf32>
    %79 = vector.shape_cast %78 : vector<8xf32> to vector<8x1xf32>
    %80 = tpu.reciprocal %79 {approx = true} : vector<8x1xf32> -> vector<8x1xf32>
    %81 = vector.broadcast %80 : vector<8x1xf32> to vector<8x8xf32>
    %82 = arith.mulf %77, %81 : vector<8x8xf32>
    %83 = arith.truncf %82 : vector<8x8xf32> to vector<8x8xbf16>
    %cst_24 = arith.constant dense<0.000000e+00> : vector<8x16xf32>
    %84 = tpu.matmul %83, %67, %cst_24 {dimension_numbers = #tpu.dot_dimension_numbers<[1], [0], [0], [1], [0, 0, 1, 1], [], []>} : vector<8x8xbf16>, vector<8x16xbf16>, vector<8x16xf32> -> vector<8x16xf32>
    %85 = tpu.concatenate %24, %44, %64, %84 in 1 : vector<8x16xf32>, vector<8x16xf32>, vector<8x16xf32>, vector<8x16xf32> -> vector<8x64xf32>
    %86 = arith.truncf %85 : vector<8x64xf32> to vector<8x64xbf16>
    %c0_25 = arith.constant 0 : index
    %c0_26 = arith.constant 0 : index
    %c0_27 = arith.constant 0 : index
    %87 = vector.load %arg2[%c0_25, %c0_26, %c0_27] : memref<1x8x64xbf16, #tpu.memory_space<vmem>>, vector<1x8x64xbf16>
    %88 = vector.shape_cast %87 : vector<1x8x64xbf16> to vector<8x64xbf16>
    %89 = vector.shape_cast %86 : vector<8x64xbf16> to vector<1x8x64xbf16>
    tpu.vector_store %arg2[%c0_25, %c0_26, %c0_27], %89 {strides = array<i32>} : memref<1x8x64xbf16, #tpu.memory_space<vmem>>, vector<1x8x64xbf16>,
    return
  }
  func.func @transform_0(%arg0: i32) -> (i32, i32, i32) {
    %c0_i32 = arith.constant 0 : i32
    %c0_i32_0 = arith.constant 0 : i32
    %c0_i32_1 = arith.constant 0 : i32
    return %arg0, %c0_i32, %c0_i32_0 : i32, i32, i32
  }
  func.func @transform_1(%arg0: i32) -> (i32, i32, i32) {
    %c0_i32 = arith.constant 0 : i32
    %c0_i32_0 = arith.constant 0 : i32
    %c0_i32_1 = arith.constant 0 : i32
    return %arg0, %c0_i32, %c0_i32_0 : i32, i32, i32
  }
}

module attributes {stable_mosaic.version = 11 : i64} {
  func.func @_fused_linear_kernel(%arg0: i32, %arg1: i32, %arg2: memref<16x64xbf16, #tpu.memory_space<vmem>>, %arg3: memref<1x64xf32, #tpu.memory_space<vmem>>, %arg4: memref<1x64xf32, #tpu.memory_space<vmem>>, %arg5: memref<64x192xbf16, #tpu.memory_space<vmem>>, %arg6: memref<1x192xf32, #tpu.memory_space<vmem>>, %arg7: memref<16x192xbf16, #tpu.memory_space<vmem>>) attributes {dimension_semantics = [#tpu.dimension_semantics<parallel>, #tpu.dimension_semantics<parallel>], iteration_bounds = array<i64: 1, 1>, scalar_prefetch = 0 : i64, scratch_operands = 0 : i64, tpu.core_type = #tpu.core_type<tc>, window_params = [{transform_indices = @transform_0, window_bounds = array<i64: 16, 64>}, {pipeline_mode = #tpu.pipeline_mode<synchronous>, transform_indices = @transform_1, window_bounds = array<i64: 1, 64>}, {pipeline_mode = #tpu.pipeline_mode<synchronous>, transform_indices = @transform_2, window_bounds = array<i64: 1, 64>}, {transform_indices = @transform_3, window_bounds = array<i64: 64, 192>}, {transform_indices = @transform_4, window_bounds = array<i64: 1, 192>}, {transform_indices = @transform_5, window_bounds = array<i64: 16, 192>}]} {
    %c0 = arith.constant 0 : index
    %c0_0 = arith.constant 0 : index
    %0 = vector.load %arg2[%c0, %c0_0] : memref<16x64xbf16, #tpu.memory_space<vmem>>, vector<16x64xbf16>
    %1 = arith.extf %0 : vector<16x64xbf16> to vector<16x64xf32>
    %cst = arith.constant dense<0.000000e+00> : vector<16xf32>
    %2 = vector.multi_reduction <add>, %1, %cst [1] : vector<16x64xf32> to vector<16xf32>
    %3 = vector.shape_cast %2 : vector<16xf32> to vector<16x1xf32>
    %cst_1 = arith.constant 6.400000e+01 : f32
    %4 = vector.broadcast %cst_1 : f32 to vector<16x1xf32>
    %5 = arith.divf %3, %4 : vector<16x1xf32>
    %6 = vector.broadcast %5 : vector<16x1xf32> to vector<16x64xf32>
    %7 = arith.subf %1, %6 : vector<16x64xf32>
    %8 = arith.mulf %7, %7 : vector<16x64xf32>
    %cst_2 = arith.constant dense<0.000000e+00> : vector<16xf32>
    %9 = vector.multi_reduction <add>, %8, %cst_2 [1] : vector<16x64xf32> to vector<16xf32>
    %10 = vector.shape_cast %9 : vector<16xf32> to vector<16x1xf32>
    %cst_3 = arith.constant 6.400000e+01 : f32
    %11 = vector.broadcast %cst_3 : f32 to vector<16x1xf32>
    %12 = arith.divf %10, %11 : vector<16x1xf32>
    %13 = vector.broadcast %5 : vector<16x1xf32> to vector<16x64xf32>
    %14 = arith.subf %1, %13 : vector<16x64xf32>
    %cst_4 = arith.constant 9.99999974E-6 : f32
    %15 = vector.broadcast %cst_4 : f32 to vector<16x1xf32>
    %16 = arith.addf %12, %15 : vector<16x1xf32>
    %17 = math.rsqrt %16 : vector<16x1xf32>
    %18 = vector.broadcast %17 : vector<16x1xf32> to vector<16x64xf32>
    %19 = arith.mulf %14, %18 : vector<16x64xf32>
    %c0_5 = arith.constant 0 : index
    %c0_6 = arith.constant 0 : index
    %20 = vector.load %arg3[%c0_5, %c0_6] : memref<1x64xf32, #tpu.memory_space<vmem>>, vector<1x64xf32>
    %21 = vector.broadcast %20 : vector<1x64xf32> to vector<16x64xf32>
    %22 = arith.mulf %19, %21 : vector<16x64xf32>
    %c0_7 = arith.constant 0 : index
    %c0_8 = arith.constant 0 : index
    %23 = vector.load %arg4[%c0_7, %c0_8] : memref<1x64xf32, #tpu.memory_space<vmem>>, vector<1x64xf32>
    %24 = vector.broadcast %23 : vector<1x64xf32> to vector<16x64xf32>
    %25 = arith.addf %22, %24 : vector<16x64xf32>
    %26 = arith.truncf %25 : vector<16x64xf32> to vector<16x64xbf16>
    %c0_9 = arith.constant 0 : index
    %c0_10 = arith.constant 0 : index
    %27 = vector.load %arg5[%c0_9, %c0_10] : memref<64x192xbf16, #tpu.memory_space<vmem>>, vector<64x192xbf16>
    %cst_11 = arith.constant dense<0.000000e+00> : vector<16x192xf32>
    %28 = tpu.matmul %26, %27, %cst_11 {dimension_numbers = #tpu.dot_dimension_numbers<[1], [0], [0], [1], [0, 0, 1, 1], [], []>} : vector<16x64xbf16>, vector<64x192xbf16>, vector<16x192xf32> -> vector<16x192xf32>
    %c0_12 = arith.constant 0 : index
    %c0_13 = arith.constant 0 : index
    %29 = vector.load %arg6[%c0_12, %c0_13] : memref<1x192xf32, #tpu.memory_space<vmem>>, vector<1x192xf32>
    %30 = vector.broadcast %29 : vector<1x192xf32> to vector<16x192xf32>
    %31 = arith.addf %28, %30 : vector<16x192xf32>
    %32 = arith.truncf %31 : vector<16x192xf32> to vector<16x192xbf16>
    %c0_14 = arith.constant 0 : index
    %c0_15 = arith.constant 0 : index
    %33 = vector.load %arg7[%c0_14, %c0_15] : memref<16x192xbf16, #tpu.memory_space<vmem>>, vector<16x192xbf16>
    tpu.vector_store %arg7[%c0_14, %c0_15], %32 {strides = array<i32>} : memref<16x192xbf16, #tpu.memory_space<vmem>>, vector<16x192xbf16>,
    return
  }
  func.func @transform_0(%arg0: i32, %arg1: i32) -> (i32, i32) {
    %c0_i32 = arith.constant 0 : i32
    %c0_i32_0 = arith.constant 0 : i32
    return %arg0, %c0_i32 : i32, i32
  }
  func.func @transform_1(%arg0: i32, %arg1: i32) -> (i32, i32) {
    %c0_i32 = arith.constant 0 : i32
    %c0_i32_0 = arith.constant 0 : i32
    %c0_i32_1 = arith.constant 0 : i32
    return %c0_i32, %c0_i32_0 : i32, i32
  }
  func.func @transform_2(%arg0: i32, %arg1: i32) -> (i32, i32) {
    %c0_i32 = arith.constant 0 : i32
    %c0_i32_0 = arith.constant 0 : i32
    %c0_i32_1 = arith.constant 0 : i32
    return %c0_i32, %c0_i32_0 : i32, i32
  }
  func.func @transform_3(%arg0: i32, %arg1: i32) -> (i32, i32) {
    %c0_i32 = arith.constant 0 : i32
    %c0_i32_0 = arith.constant 0 : i32
    return %c0_i32, %arg1 : i32, i32
  }
  func.func @transform_4(%arg0: i32, %arg1: i32) -> (i32, i32) {
    %c0_i32 = arith.constant 0 : i32
    %c0_i32_0 = arith.constant 0 : i32
    return %c0_i32, %arg1 : i32, i32
  }
  func.func @transform_5(%arg0: i32, %arg1: i32) -> (i32, i32) {
    %c0_i32 = arith.constant 0 : i32
    return %arg0, %arg1 : i32, i32
  }
}

module attributes {stable_mosaic.version = 11 : i64} {
  func.func @_fused_linear_kernel(%arg0: i32, %arg1: i32, %arg2: memref<16x64xbf16, #tpu.memory_space<vmem>>, %arg3: memref<64x64xbf16, #tpu.memory_space<vmem>>, %arg4: memref<1x64xf32, #tpu.memory_space<vmem>>, %arg5: memref<16x64xbf16, #tpu.memory_space<vmem>>, %arg6: memref<16x64xbf16, #tpu.memory_space<vmem>>) attributes {dimension_semantics = [#tpu.dimension_semantics<parallel>, #tpu.dimension_semantics<parallel>], iteration_bounds = array<i64: 1, 1>, scalar_prefetch = 0 : i64, scratch_operands = 0 : i64, tpu.core_type = #tpu.core_type<tc>, window_params = [{transform_indices = @transform_0, window_bounds = array<i64: 16, 64>}, {transform_indices = @transform_1, window_bounds = array<i64: 64, 64>}, {transform_indices = @transform_2, window_bounds = array<i64: 1, 64>}, {transform_indices = @transform_3, window_bounds = array<i64: 16, 64>}, {transform_indices = @transform_4, window_bounds = array<i64: 16, 64>}]} {
    %c0 = arith.constant 0 : index
    %c0_0 = arith.constant 0 : index
    %0 = vector.load %arg2[%c0, %c0_0] : memref<16x64xbf16, #tpu.memory_space<vmem>>, vector<16x64xbf16>
    %c0_1 = arith.constant 0 : index
    %c0_2 = arith.constant 0 : index
    %1 = vector.load %arg3[%c0_1, %c0_2] : memref<64x64xbf16, #tpu.memory_space<vmem>>, vector<64x64xbf16>
    %cst = arith.constant dense<0.000000e+00> : vector<16x64xf32>
    %2 = tpu.matmul %0, %1, %cst {dimension_numbers = #tpu.dot_dimension_numbers<[1], [0], [0], [1], [0, 0, 1, 1], [], []>} : vector<16x64xbf16>, vector<64x64xbf16>, vector<16x64xf32> -> vector<16x64xf32>
    %c0_3 = arith.constant 0 : index
    %c0_4 = arith.constant 0 : index
    %3 = vector.load %arg4[%c0_3, %c0_4] : memref<1x64xf32, #tpu.memory_space<vmem>>, vector<1x64xf32>
    %4 = vector.broadcast %3 : vector<1x64xf32> to vector<16x64xf32>
    %5 = arith.addf %2, %4 : vector<16x64xf32>
    %c0_5 = arith.constant 0 : index
    %c0_6 = arith.constant 0 : index
    %6 = vector.load %arg5[%c0_5, %c0_6] : memref<16x64xbf16, #tpu.memory_space<vmem>>, vector<16x64xbf16>
    %7 = arith.extf %6 : vector<16x64xbf16> to vector<16x64xf32>
    %8 = arith.addf %5, %7 : vector<16x64xf32>
    %9 = arith.truncf %8 : vector<16x64xf32> to vector<16x64xbf16>
    %c0_7 = arith.constant 0 : index
    %c0_8 = arith.constant 0 : index
    %10 = vector.load %arg6[%c0_7, %c0_8] : memref<16x64xbf16, #tpu.memory_space<vmem>>, vector<16x64xbf16>
    tpu.vector_store %arg6[%c0_7, %c0_8], %9 {strides = array<i32>} : memref<16x64xbf16, #tpu.memory_space<vmem>>, vector<16x64xbf16>,
    return
  }
  func.func @transform_0(%arg0: i32, %arg1: i32) -> (i32, i32) {
    %c0_i32 = arith.constant 0 : i32
    %c0_i32_0 = arith.constant 0 : i32
    return %arg0, %c0_i32 : i32, i32
  }
  func.func @transform_1(%arg0: i32, %arg1: i32) -> (i32, i32) {
    %c0_i32 = arith.constant 0 : i32
    %c0_i32_0 = arith.constant 0 : i32
    return %c0_i32, %arg1 : i32, i32
  }
  func.func @transform_2(%arg0: i32, %arg1: i32) -> (i32, i32) {
    %c0_i32 = arith.constant 0 : i32
    %c0_i32_0 = arith.constant 0 : i32
    return %c0_i32, %arg1 : i32, i32
  }
  func.func @transform_3(%arg0: i32, %arg1: i32) -> (i32, i32) {
    %c0_i32 = arith.constant 0 : i32
    return %arg0, %arg1 : i32, i32
  }
  func.func @transform_4(%arg0: i32, %arg1: i32) -> (i32, i32) {
    %c0_i32 = arith.constant 0 : i32
    return %arg0, %arg1 : i32, i32
  }
}

module attributes {stable_mosaic.version = 11 : i64} {
  func.func @_fused_linear_kernel(%arg0: i32, %arg1: i32, %arg2: memref<16x64xbf16, #tpu.memory_space<vmem>>, %arg3: memref<1x64xf32, #tpu.memory_space<vmem>>, %arg4: memref<1x64xf32, #tpu.memory_space<vmem>>, %arg5: memref<64x256xbf16, #tpu.memory_space<vmem>>, %arg6: memref<1x256xf32, #tpu.memory_space<vmem>>, %arg7: memref<16x256xbf16, #tpu.memory_space<vmem>>) attributes {dimension_semantics = [#tpu.dimension_semantics<parallel>, #tpu.dimension_semantics<parallel>], iteration_bounds = array<i64: 1, 1>, scalar_prefetch = 0 : i64, scratch_operands = 0 : i64, tpu.core_type = #tpu.core_type<tc>, window_params = [{transform_indices = @transform_0, window_bounds = array<i64: 16, 64>}, {pipeline_mode = #tpu.pipeline_mode<synchronous>, transform_indices = @transform_1, window_bounds = array<i64: 1, 64>}, {pipeline_mode = #tpu.pipeline_mode<synchronous>, transform_indices = @transform_2, window_bounds = array<i64: 1, 64>}, {transform_indices = @transform_3, window_bounds = array<i64: 64, 256>}, {transform_indices = @transform_4, window_bounds = array<i64: 1, 256>}, {transform_indices = @transform_5, window_bounds = array<i64: 16, 256>}]} {
    %c0 = arith.constant 0 : index
    %c0_0 = arith.constant 0 : index
    %0 = vector.load %arg2[%c0, %c0_0] : memref<16x64xbf16, #tpu.memory_space<vmem>>, vector<16x64xbf16>
    %1 = arith.extf %0 : vector<16x64xbf16> to vector<16x64xf32>
    %cst = arith.constant dense<0.000000e+00> : vector<16xf32>
    %2 = vector.multi_reduction <add>, %1, %cst [1] : vector<16x64xf32> to vector<16xf32>
    %3 = vector.shape_cast %2 : vector<16xf32> to vector<16x1xf32>
    %cst_1 = arith.constant 6.400000e+01 : f32
    %4 = vector.broadcast %cst_1 : f32 to vector<16x1xf32>
    %5 = arith.divf %3, %4 : vector<16x1xf32>
    %6 = vector.broadcast %5 : vector<16x1xf32> to vector<16x64xf32>
    %7 = arith.subf %1, %6 : vector<16x64xf32>
    %8 = arith.mulf %7, %7 : vector<16x64xf32>
    %cst_2 = arith.constant dense<0.000000e+00> : vector<16xf32>
    %9 = vector.multi_reduction <add>, %8, %cst_2 [1] : vector<16x64xf32> to vector<16xf32>
    %10 = vector.shape_cast %9 : vector<16xf32> to vector<16x1xf32>
    %cst_3 = arith.constant 6.400000e+01 : f32
    %11 = vector.broadcast %cst_3 : f32 to vector<16x1xf32>
    %12 = arith.divf %10, %11 : vector<16x1xf32>
    %13 = vector.broadcast %5 : vector<16x1xf32> to vector<16x64xf32>
    %14 = arith.subf %1, %13 : vector<16x64xf32>
    %cst_4 = arith.constant 9.99999974E-6 : f32
    %15 = vector.broadcast %cst_4 : f32 to vector<16x1xf32>
    %16 = arith.addf %12, %15 : vector<16x1xf32>
    %17 = math.rsqrt %16 : vector<16x1xf32>
    %18 = vector.broadcast %17 : vector<16x1xf32> to vector<16x64xf32>
    %19 = arith.mulf %14, %18 : vector<16x64xf32>
    %c0_5 = arith.constant 0 : index
    %c0_6 = arith.constant 0 : index
    %20 = vector.load %arg3[%c0_5, %c0_6] : memref<1x64xf32, #tpu.memory_space<vmem>>, vector<1x64xf32>
    %21 = vector.broadcast %20 : vector<1x64xf32> to vector<16x64xf32>
    %22 = arith.mulf %19, %21 : vector<16x64xf32>
    %c0_7 = arith.constant 0 : index
    %c0_8 = arith.constant 0 : index
    %23 = vector.load %arg4[%c0_7, %c0_8] : memref<1x64xf32, #tpu.memory_space<vmem>>, vector<1x64xf32>
    %24 = vector.broadcast %23 : vector<1x64xf32> to vector<16x64xf32>
    %25 = arith.addf %22, %24 : vector<16x64xf32>
    %26 = arith.truncf %25 : vector<16x64xf32> to vector<16x64xbf16>
    %c0_9 = arith.constant 0 : index
    %c0_10 = arith.constant 0 : index
    %27 = vector.load %arg5[%c0_9, %c0_10] : memref<64x256xbf16, #tpu.memory_space<vmem>>, vector<64x256xbf16>
    %cst_11 = arith.constant dense<0.000000e+00> : vector<16x256xf32>
    %28 = tpu.matmul %26, %27, %cst_11 {dimension_numbers = #tpu.dot_dimension_numbers<[1], [0], [0], [1], [0, 0, 1, 1], [], []>} : vector<16x64xbf16>, vector<64x256xbf16>, vector<16x256xf32> -> vector<16x256xf32>
    %c0_12 = arith.constant 0 : index
    %c0_13 = arith.constant 0 : index
    %29 = vector.load %arg6[%c0_12, %c0_13] : memref<1x256xf32, #tpu.memory_space<vmem>>, vector<1x256xf32>
    %30 = vector.broadcast %29 : vector<1x256xf32> to vector<16x256xf32>
    %31 = arith.addf %28, %30 : vector<16x256xf32>
    %cst_14 = arith.constant 5.000000e-01 : f32
    %32 = vector.broadcast %cst_14 : f32 to vector<16x256xf32>
    %33 = arith.mulf %32, %31 : vector<16x256xf32>
    %cst_15 = arith.constant 4.471500e-02 : f32
    %34 = vector.broadcast %cst_15 : f32 to vector<16x256xf32>
    %35 = arith.mulf %34, %31 : vector<16x256xf32>
    %36 = arith.mulf %35, %31 : vector<16x256xf32>
    %37 = arith.mulf %36, %31 : vector<16x256xf32>
    %38 = arith.addf %31, %37 : vector<16x256xf32>
    %cst_16 = arith.constant 0.797884583 : f32
    %39 = vector.broadcast %cst_16 : f32 to vector<16x256xf32>
    %40 = arith.mulf %39, %38 : vector<16x256xf32>
    %41 = math.tanh %40 : vector<16x256xf32>
    %cst_17 = arith.constant 1.000000e+00 : f32
    %42 = vector.broadcast %cst_17 : f32 to vector<16x256xf32>
    %43 = arith.addf %42, %41 : vector<16x256xf32>
    %44 = arith.mulf %33, %43 : vector<16x256xf32>
    %45 = arith.truncf %44 : vector<16x256xf32> to vector<16x256xbf16>
    %c0_18 = arith.constant 0 : index
    %c0_19 = arith.constant 0 : index
    %46 = vector.load %arg7[%c0_18, %c0_19] : memref<16x256xbf16, #tpu.memory_space<vmem>>, vector<16x256xbf16>
    tpu.vector_store %arg7[%c0_18, %c0_19], %45 {strides = array<i32>} : memref<16x256xbf16, #tpu.memory_space<vmem>>, vector<16x256xbf16>,
    return
  }
  func.func @transform_0(%arg0: i32, %arg1: i32) -> (i32, i32) {
    %c0_i32 = arith.constant 0 : i32
    %c0_i32_0 = arith.constant 0 : i32
    return %arg0, %c0_i32 : i32, i32
  }
  func.func @transform_1(%arg0: i32, %arg1: i32) -> (i32, i32) {
    %c0_i32 = arith.constant 0 : i32
    %c0_i32_0 = arith.constant 0 : i32
    %c0_i32_1 = arith.constant 0 : i32
    return %c0_i32, %c0_i32_0 : i32, i32
  }
  func.func @transform_2(%arg0: i32, %arg1: i32) -> (i32, i32) {
    %c0_i32 = arith.constant 0 : i32
    %c0_i32_0 = arith.constant 0 : i32
    %c0_i32_1 = arith.constant 0 : i32
    return %c0_i32, %c0_i32_0 : i32, i32
  }
  func.func @transform_3(%arg0: i32, %arg1: i32) -> (i32, i32) {
    %c0_i32 = arith.constant 0 : i32
    %c0_i32_0 = arith.constant 0 : i32
    return %c0_i32, %arg1 : i32, i32
  }
  func.func @transform_4(%arg0: i32, %arg1: i32) -> (i32, i32) {
    %c0_i32 = arith.constant 0 : i32
    %c0_i32_0 = arith.constant 0 : i32
    return %c0_i32, %arg1 : i32, i32
  }
  func.func @transform_5(%arg0: i32, %arg1: i32) -> (i32, i32) {
    %c0_i32 = arith.constant 0 : i32
    return %arg0, %arg1 : i32, i32
  }
}

module attributes {stable_mosaic.version = 11 : i64} {
  func.func @_fused_linear_kernel(%arg0: i32, %arg1: i32, %arg2: memref<16x256xbf16, #tpu.memory_space<vmem>>, %arg3: memref<256x64xbf16, #tpu.memory_space<vmem>>, %arg4: memref<1x64xf32, #tpu.memory_space<vmem>>, %arg5: memref<16x64xbf16, #tpu.memory_space<vmem>>, %arg6: memref<16x64xbf16, #tpu.memory_space<vmem>>) attributes {dimension_semantics = [#tpu.dimension_semantics<parallel>, #tpu.dimension_semantics<parallel>], iteration_bounds = array<i64: 1, 1>, scalar_prefetch = 0 : i64, scratch_operands = 0 : i64, tpu.core_type = #tpu.core_type<tc>, window_params = [{transform_indices = @transform_0, window_bounds = array<i64: 16, 256>}, {transform_indices = @transform_1, window_bounds = array<i64: 256, 64>}, {transform_indices = @transform_2, window_bounds = array<i64: 1, 64>}, {transform_indices = @transform_3, window_bounds = array<i64: 16, 64>}, {transform_indices = @transform_4, window_bounds = array<i64: 16, 64>}]} {
    %c0 = arith.constant 0 : index
    %c0_0 = arith.constant 0 : index
    %0 = vector.load %arg2[%c0, %c0_0] : memref<16x256xbf16, #tpu.memory_space<vmem>>, vector<16x256xbf16>
    %c0_1 = arith.constant 0 : index
    %c0_2 = arith.constant 0 : index
    %1 = vector.load %arg3[%c0_1, %c0_2] : memref<256x64xbf16, #tpu.memory_space<vmem>>, vector<256x64xbf16>
    %cst = arith.constant dense<0.000000e+00> : vector<16x64xf32>
    %2 = tpu.matmul %0, %1, %cst {dimension_numbers = #tpu.dot_dimension_numbers<[1], [0], [0], [1], [0, 0, 1, 1], [], []>} : vector<16x256xbf16>, vector<256x64xbf16>, vector<16x64xf32> -> vector<16x64xf32>
    %c0_3 = arith.constant 0 : index
    %c0_4 = arith.constant 0 : index
    %3 = vector.load %arg4[%c0_3, %c0_4] : memref<1x64xf32, #tpu.memory_space<vmem>>, vector<1x64xf32>
    %4 = vector.broadcast %3 : vector<1x64xf32> to vector<16x64xf32>
    %5 = arith.addf %2, %4 : vector<16x64xf32>
    %c0_5 = arith.constant 0 : index
    %c0_6 = arith.constant 0 : index
    %6 = vector.load %arg5[%c0_5, %c0_6] : memref<16x64xbf16, #tpu.memory_space<vmem>>, vector<16x64xbf16>
    %7 = arith.extf %6 : vector<16x64xbf16> to vector<16x64xf32>
    %8 = arith.addf %5, %7 : vector<16x64xf32>
    %9 = arith.truncf %8 : vector<16x64xf32> to vector<16x64xbf16>
    %c0_7 = arith.constant 0 : index
    %c0_8 = arith.constant 0 : index
    %10 = vector.load %arg6[%c0_7, %c0_8] : memref<16x64xbf16, #tpu.memory_space<vmem>>, vector<16x64xbf16>
    tpu.vector_store %arg6[%c0_7, %c0_8], %9 {strides = array<i32>} : memref<16x64xbf16, #tpu.memory_space<vmem>>, vector<16x64xbf16>,
    return
  }
  func.func @transform_0(%arg0: i32, %arg1: i32) -> (i32, i32) {
    %c0_i32 = arith.constant 0 : i32
    %c0_i32_0 = arith.constant 0 : i32
    return %arg0, %c0_i32 : i32, i32
  }
  func.func @transform_1(%arg0: i32, %arg1: i32) -> (i32, i32) {
    %c0_i32 = arith.constant 0 : i32
    %c0_i32_0 = arith.constant 0 : i32
    return %c0_i32, %arg1 : i32, i32
  }
  func.func @transform_2(%arg0: i32, %arg1: i32) -> (i32, i32) {
    %c0_i32 = arith.constant 0 : i32
    %c0_i32_0 = arith.constant 0 : i32
    return %c0_i32, %arg1 : i32, i32
  }
  func.func @transform_3(%arg0: i32, %arg1: i32) -> (i32, i32) {
    %c0_i32 = arith.constant 0 : i32
    return %arg0, %arg1 : i32, i32
  }
  func.func @transform_4(%arg0: i32, %arg1: i32) -> (i32, i32) {
    %c0_i32 = arith.constant 0 : i32
    return %arg0, %arg1 : i32, i32
  }
}

module attributes {stable_mosaic.version = 11 : i64} {
  func.func @_fused_linear_kernel(%arg0: i32, %arg1: i32, %arg2: memref<16x64xbf16, #tpu.memory_space<vmem>>, %arg3: memref<1x64xf32, #tpu.memory_space<vmem>>, %arg4: memref<1x64xf32, #tpu.memory_space<vmem>>, %arg5: memref<64x128xbf16, #tpu.memory_space<vmem>>, %arg6: memref<1x128xf32, #tpu.memory_space<vmem>>, %arg7: memref<16x128xf32, #tpu.memory_space<vmem>>) attributes {dimension_semantics = [#tpu.dimension_semantics<parallel>, #tpu.dimension_semantics<parallel>], iteration_bounds = array<i64: 1, 5>, scalar_prefetch = 0 : i64, scratch_operands = 0 : i64, tpu.core_type = #tpu.core_type<tc>, window_params = [{transform_indices = @transform_0, window_bounds = array<i64: 16, 64>}, {pipeline_mode = #tpu.pipeline_mode<synchronous>, transform_indices = @transform_1, window_bounds = array<i64: 1, 64>}, {pipeline_mode = #tpu.pipeline_mode<synchronous>, transform_indices = @transform_2, window_bounds = array<i64: 1, 64>}, {transform_indices = @transform_3, window_bounds = array<i64: 64, 128>}, {transform_indices = @transform_4, window_bounds = array<i64: 1, 128>}, {transform_indices = @transform_5, window_bounds = array<i64: 16, 128>}]} {
    %c0 = arith.constant 0 : index
    %c0_0 = arith.constant 0 : index
    %0 = vector.load %arg2[%c0, %c0_0] : memref<16x64xbf16, #tpu.memory_space<vmem>>, vector<16x64xbf16>
    %1 = arith.extf %0 : vector<16x64xbf16> to vector<16x64xf32>
    %cst = arith.constant dense<0.000000e+00> : vector<16xf32>
    %2 = vector.multi_reduction <add>, %1, %cst [1] : vector<16x64xf32> to vector<16xf32>
    %3 = vector.shape_cast %2 : vector<16xf32> to vector<16x1xf32>
    %cst_1 = arith.constant 6.400000e+01 : f32
    %4 = vector.broadcast %cst_1 : f32 to vector<16x1xf32>
    %5 = arith.divf %3, %4 : vector<16x1xf32>
    %6 = vector.broadcast %5 : vector<16x1xf32> to vector<16x64xf32>
    %7 = arith.subf %1, %6 : vector<16x64xf32>
    %8 = arith.mulf %7, %7 : vector<16x64xf32>
    %cst_2 = arith.constant dense<0.000000e+00> : vector<16xf32>
    %9 = vector.multi_reduction <add>, %8, %cst_2 [1] : vector<16x64xf32> to vector<16xf32>
    %10 = vector.shape_cast %9 : vector<16xf32> to vector<16x1xf32>
    %cst_3 = arith.constant 6.400000e+01 : f32
    %11 = vector.broadcast %cst_3 : f32 to vector<16x1xf32>
    %12 = arith.divf %10, %11 : vector<16x1xf32>
    %13 = vector.broadcast %5 : vector<16x1xf32> to vector<16x64xf32>
    %14 = arith.subf %1, %13 : vector<16x64xf32>
    %cst_4 = arith.constant 9.99999974E-6 : f32
    %15 = vector.broadcast %cst_4 : f32 to vector<16x1xf32>
    %16 = arith.addf %12, %15 : vector<16x1xf32>
    %17 = math.rsqrt %16 : vector<16x1xf32>
    %18 = vector.broadcast %17 : vector<16x1xf32> to vector<16x64xf32>
    %19 = arith.mulf %14, %18 : vector<16x64xf32>
    %c0_5 = arith.constant 0 : index
    %c0_6 = arith.constant 0 : index
    %20 = vector.load %arg3[%c0_5, %c0_6] : memref<1x64xf32, #tpu.memory_space<vmem>>, vector<1x64xf32>
    %21 = vector.broadcast %20 : vector<1x64xf32> to vector<16x64xf32>
    %22 = arith.mulf %19, %21 : vector<16x64xf32>
    %c0_7 = arith.constant 0 : index
    %c0_8 = arith.constant 0 : index
    %23 = vector.load %arg4[%c0_7, %c0_8] : memref<1x64xf32, #tpu.memory_space<vmem>>, vector<1x64xf32>
    %24 = vector.broadcast %23 : vector<1x64xf32> to vector<16x64xf32>
    %25 = arith.addf %22, %24 : vector<16x64xf32>
    %26 = arith.truncf %25 : vector<16x64xf32> to vector<16x64xbf16>
    %c0_9 = arith.constant 0 : index
    %c0_10 = arith.constant 0 : index
    %27 = vector.load %arg5[%c0_9, %c0_10] : memref<64x128xbf16, #tpu.memory_space<vmem>>, vector<64x128xbf16>
    %cst_11 = arith.constant dense<0.000000e+00> : vector<16x128xf32>
    %28 = tpu.matmul %26, %27, %cst_11 {dimension_numbers = #tpu.dot_dimension_numbers<[1], [0], [0], [1], [0, 0, 1, 1], [], []>} : vector<16x64xbf16>, vector<64x128xbf16>, vector<16x128xf32> -> vector<16x128xf32>
    %c0_12 = arith.constant 0 : index
    %c0_13 = arith.constant 0 : index
    %29 = vector.load %arg6[%c0_12, %c0_13] : memref<1x128xf32, #tpu.memory_space<vmem>>, vector<1x128xf32>
    %30 = vector.broadcast %29 : vector<1x128xf32> to vector<16x128xf32>
    %31 = arith.addf %28, %30 : vector<16x128xf32>
    %c0_14 = arith.constant 0 : index
    %c0_15 = arith.constant 0 : index
    %32 = vector.load %arg7[%c0_14, %c0_15] : memref<16x128xf32, #tpu.memory_space<vmem>>, vector<16x128xf32>
    tpu.vector_store %arg7[%c0_14, %c0_15], %31 {strides = array<i32>} : memref<16x128xf32, #tpu.memory_space<vmem>>, vector<16x128xf32>,
    return
  }
  func.func @transform_0(%arg0: i32, %arg1: i32) -> (i32, i32) {
    %c0_i32 = arith.constant 0 : i32
    %c0_i32_0 = arith.constant 0 : i32
    return %arg0, %c0_i32 : i32, i32
  }
  func.func @transform_1(%arg0: i32, %arg1: i32) -> (i32, i32) {
    %c0_i32 = arith.constant 0 : i32
    %c0_i32_0 = arith.constant 0 : i32
    %c0_i32_1 = arith.constant 0 : i32
    return %c0_i32, %c0_i32_0 : i32, i32
  }
  func.func @transform_2(%arg0: i32, %arg1: i32) -> (i32, i32) {
    %c0_i32 = arith.constant 0 : i32
    %c0_i32_0 = arith.constant 0 : i32
    %c0_i32_1 = arith.constant 0 : i32
    return %c0_i32, %c0_i32_0 : i32, i32
  }
  func.func @transform_3(%arg0: i32, %arg1: i32) -> (i32, i32) {
    %c0_i32 = arith.constant 0 : i32
    %c0_i32_0 = arith.constant 0 : i32
    return %c0_i32, %arg1 : i32, i32
  }
  func.func @transform_4(%arg0: i32, %arg1: i32) -> (i32, i32) {
    %c0_i32 = arith.constant 0 : i32
    %c0_i32_0 = arith.constant 0 : i32
    return %c0_i32, %arg1 : i32, i32
  }
  func.func @transform_5(%arg0: i32, %arg1: i32) -> (i32, i32) {
    %c0_i32 = arith.constant 0 : i32
    return %arg0, %arg1 : i32, i32
  }
}

</mosaic_0001>

<bundles_post_ra>
// kernel: gpt2_forward.11
= control target key start
LH: loop header
LB: loop body
LE: loop exit
PB: predicated region body
PF: predicated region fallthrough
CT: control target
= control target key end

     0   :  { %vm25_vm0 = vcmask 523264   ;;  %v235_v23 = vmov 0   ;;  %v82_v41 = vlaneseq  ;;  %vm190_vm1 = vcmask 1043456   ;;  %s313_s0 = inlined_call_operand.vmem [shape: bf16[16,64], index: 0, kind: input, shape index: {}]   ;;  %s314_s3 = inlined_call_operand.vmem [shape: bf16[64,192], index: 3, kind: input, shape index: {}]   ;;  %s315_s1 = inlined_call_operand.vmem [shape: f32[1,64], index: 1, kind: input, shape index: {}]   ;;  %s316_s2 = inlined_call_operand.vmem [shape: f32[1,64], index: 2, kind: input, shape index: {}]   ;;  %s317_s4 = inlined_call_operand.vmem [shape: f32[1,192], index: 4, kind: input, shape index: {}]   ;;  %s318_s5 = inlined_call_operand.vmem [shape: bf16[16,192], index: 5, kind: output, shape index: {}]  }
   0x1   :  { %v215_v0 = vld [vmem:[%s313_s0] sm:$0xff]   ;;  %v222_v17 = vld [vmem:[%s314_s3 + $0x14] ss:$8 sps:$4 sm:$0xff]   ;;  %v224_v18 = vld [vmem:[%s314_s3 + $0x10] ss:$8 sps:$4 sm:$0xff]   ;;  %167 = vmatprep.mubr.bf16.mxu0 %v235_v23  ;;  %vm191_vm2 = vcmask 523268  }
   0x2   :  { %v216_v1 = vunpack.c.l.bf16 %v215_v0  ;;  %v217_v2 = vunpack.c.h.bf16 %v215_v0  ;;  %v219_v15 = vld [vmem:[%s314_s3 + $0x4] ss:$8 sps:$4 sm:$0xff]   ;;  %v221_v16 = vld [vmem:[%s314_s3] ss:$8 sps:$4 sm:$0xff]   ;;  %v228_v21 = vld [vmem:[%s314_s3 + $0x34] ss:$8 sps:$4 sm:$0xff]  }
   0x3   :  { %135 = vmatprep.subr.bf16.mxu0 %v219_v15  ;;  %v225_v19 = vld [vmem:[%s314_s3 + $0x24] ss:$8 sps:$4 sm:$0xff]   ;;  %v227_v20 = vld [vmem:[%s314_s3 + $0x20] ss:$8 sps:$4 sm:$0xff]   ;;  %v230_v22 = vld [vmem:[%s314_s3 + $0x30] ss:$8 sps:$4 sm:$0xff]  }
   0x4   :  { %v26_v3 = vsel %vm25_vm0, %v216_v1, 0.0  ;;  %v29_v4 = vsel %vm25_vm0, %v217_v2, 0.0  ;;  %136 = vmatpush1.bf16.msra.mxu0 %v221_v16  ;;  %v199_v32 = vld [vmem:[%s315_s1] ss:$0 sm:$0xff]  ;;  %v83_v42 = vshrl.u32 %v82_v41, 7  ;;  %vm192_vm3 = vmor %vm191_vm2, %vm190_vm1 }
   0x5   :  { %27 = vadd.xlane.f32.xlu0 %v26_v3  ;;  %137 = vmatprep.subr.bf16.mxu0 %v222_v17  ;;  %v200_v36 = vld [vmem:[%s316_s2] ss:$0 sm:$0xff] }
   0x6   :  { %v84_v43 = vsub.s32 0, %v83_v42  ;;  %v80_v44 = vld [vmem:[%s317_s4] sm:$0x3]  ;;  %v88_v45 = vsub.s32 1, %v83_v42 }
   0x8   :  { %138 = vmatpush1.bf16.msra.mxu0 %v224_v18  ;;  %v85_v46 = vrot.slane %v80_v44, %v84_v43  ;;  %v89_v47 = vrot.slane %v80_v44, %v88_v45 }
   0x9   :  { %30 = vadd.xlane.f32.xlu0 %v29_v4  ;;  %139 = vmatprep.subr.bf16.mxu0 %v225_v19 }
   0xc   :  { %140 = vmatpush1.bf16.msra.mxu0 %v227_v20 }
   0xd   :  { %141 = vmatprep.subr.bf16.mxu0 %v228_v21 }
  0x10   :  { %142 = vmatpush1.bf16.msra.mxu0 %v230_v22 }
  0x92   :  { %v28_v5 = vpop.xlane.xlu0 %27 }
  0x93   :  { %v33_v6 = vmul.f32 0.015625, %v28_v5 }
  0x95   :  { %v35_v7 = vsub.f32 %v216_v1, %v33_v6 }
  0x96   :  { %v31_v8 = vpop.xlane.xlu0 %30 }
  0x97   :  { %v34_v9 = vmul.f32 0.015625, %v31_v8  ;;  %v37_v10 = vmul.f32 %v35_v7, %v35_v7 }
  0x99   :  { %v36_v11 = vsub.f32 %v217_v2, %v34_v9  ;;  %v39_v12 = vsel %vm25_vm0, %v37_v10, 0.0 }
  0x9a   :  { %40 = vadd.xlane.f32.xlu1 %v39_v12 }
  0x9b   :  { %v38_v13 = vmul.f32 %v36_v11, %v36_v11 }
  0x9d   :  { %v42_v14 = vsel %vm25_vm0, %v38_v13, 0.0 }
  0x9e   :  { %43 = vadd.xlane.f32.xlu1 %v42_v14 }
 0x127   :  { %v41_v24 = vpop.xlane.xlu1 %40 }
 0x128   :  { %v45_v25 = vmul.f32 0.015625, %v41_v24 }
 0x12a   :  { %v47_v26 = vadd.f32 1e-05, %v45_v25 }
 0x12b   :  { %v44_v27 = vpop.xlane.xlu1 %43 }
 0x12c   :  { %231 = vrsqrt.f32 %v47_v26  ;;  %v46_v28 = vmul.f32 0.015625, %v44_v27 }
 0x12e   :  { %v48_v29 = vadd.f32 1e-05, %v46_v28 }
 0x130   :  { %233 = vrsqrt.f32 %v48_v29 }
 0x136   :  { %v232_v30 = vpop.eup %231 }
 0x137   :  { %v51_v31 = vmul.f32 %v232_v30, %v35_v7 }
 0x139   :  { %v60_v35 = vmul.f32 %v199_v32, %v51_v31 }
 0x13a   :  { %v234_v33 = vpop.eup %233 }
 0x13b   :  { %v52_v34 = vmul.f32 %v234_v33, %v36_v11  ;;  %v69_v38 = vadd.f32 %v200_v36, %v60_v35 }
 0x13d   :  { %v61_v37 = vmul.f32 %v199_v32, %v52_v34 }
 0x13f   :  { %v70_v39 = vadd.f32 %v200_v36, %v61_v37 }
 0x141   :  { %v71_v40 = vpack.c.bf16 %v70_v39, %v69_v38 }
 0x143   :  { %209 = vmatmul.mubr.msk.bf16.vlgmr.msra.gmra.mrb[0].mxu0 %vm25_vm0, %v71_v40 }
 0x216   :  { %v169_v48 = vpop.f32.mrb[0].mxu0 }
 0x217   :  { %v170_v49 = vadd.f32 %v169_v48, %v85_v46  ;;  %v171_v50 = vpop.f32.mrb[1].mxu0 }
 0x218   :  { %v172_v51 = vadd.f32 %v171_v50, %v89_v47  ;;  %v173_v52 = vpop.f32.mrb[2].mxu0 }
 0x219   :  { %v174_v53 = vadd.f32 %v173_v52, %v85_v46  ;;  %v175_v54 = vpop.f32.mrb[3].mxu0 }
 0x21a   :  { %v212_v55 = vpack.c.bf16 %v172_v51, %v170_v49  ;;  %v176_v56 = vadd.f32 %v175_v54, %v89_v47 }
 0x21c   :  { %193 = vst.msk [vmem:[%s318_s5] sm:$0xff] %vm192_vm3, %v212_v55  ;;  %v213_v57 = vpack.c.bf16 %v176_v56, %v174_v53 }
 0x21e   :  { %194 = vst.msk [vmem:[%s318_s5 + $0x8] sm:$0xff] %vm192_vm3, %v213_v57 }

// kernel: gpt2_forward.13
= control target key start
LH: loop header
LB: loop body
LE: loop exit
PB: predicated region body
PF: predicated region fallthrough
CT: control target
= control target key end

     0   :  { %v169_v0 = vmov 0.0   ;;  %vm170_vm0 = vmmov 0   ;;  %vm64_vm1 = vcmask 523264   ;;  %vm123_vm2 = vcmask 519168   ;;  %s223_s1 = inlined_call_operand.vmem [shape: bf16[64,64], index: 1, kind: input, shape index: {}]   ;;  %s224_s0 = inlined_call_operand.vmem [shape: bf16[16,64], index: 0, kind: input, shape index: {}]   ;;  %s225_s3 = inlined_call_operand.vmem [shape: bf16[16,64], index: 3, kind: input, shape index: {}]   ;;  %s226_s2 = inlined_call_operand.vmem [shape: f32[1,64], index: 2, kind: input, shape index: {}]   ;;  %s227_s4 = inlined_call_operand.vmem [shape: bf16[16,64], index: 4, kind: output, shape index: {}]  }
   0x1   :  { %150 = vmatprep.subr.bf16.mxu0 %v169_v0  ;;  %v164_v1 = vld [vmem:[%s223_s1] sm:$0xff]   ;;  %158 = vmatprep.mubr.msk.bf16.mxu0 %vm170_vm0, %v169_v0  ;;  %v165_v2 = vld [vmem:[%s223_s1 + $0x8] sm:$0xff]   ;;  %v166_v3 = vld [vmem:[%s223_s1 + $0x10] sm:$0xff]  }
   0x2   :  { %151 = vmatpush3.bf16.msra.mxu0 %v164_v1  ;;  %v167_v4 = vld [vmem:[%s223_s1 + $0x18] sm:$0xff]   ;;  %v168_v5 = vld [vmem:[%s224_s0] sm:$0xff]  }
   0x3   :  { %152 = vmatprep.subr.bf16.mxu0 %v169_v0  ;;  %v142_v6 = vld [vmem:[%s225_s3] sm:$0xff]  }
   0x4   :  { %v130_v7 = vld [vmem:[%s226_s2] ss:$0 sm:$0xff]  ;;  %v143_v8 = vunpack.c.l.bf16 %v142_v6  ;;  %v144_v12 = vunpack.c.h.bf16 %v142_v6 }
   0x6   :  { %153 = vmatpush3.bf16.msra.mxu0 %v165_v2 }
   0x7   :  { %154 = vmatprep.subr.bf16.mxu0 %v169_v0 }
   0xa   :  { %155 = vmatpush3.bf16.msra.mxu0 %v166_v3 }
   0xb   :  { %156 = vmatprep.subr.bf16.mxu0 %v169_v0 }
   0xe   :  { %157 = vmatpush3.bf16.msra.mxu0 %v167_v4 }
  0x11   :  { %159 = vmatmul.mubr.msk.bf16.vlgmr.msra.gmra.mrb[0].mxu0 %vm64_vm1, %v168_v5 }
  0xe4   :  { %v102_v9 = vpop.f32.mrb[0].mxu0 }
  0xe5   :  { %v103_v10 = vadd.f32 %v130_v7, %v102_v9  ;;  %v160_v11 = vpop.f32.mrb[1].mxu0 }
  0xe6   :  { %v105_v13 = vpop.f32.mrb[2].mxu0 }
  0xe7   :  { %v113_v14 = vadd.f32 %v143_v8, %v103_v10  ;;  %v106_v15 = vadd.f32 %v130_v7, %v105_v13  ;;  %v161_v16 = vpop.f32.mrb[3].mxu0 }
  0xe9   :  { %v139_v17 = vpack.c.bf16 %v113_v14, %v113_v14  ;;  %v114_v18 = vadd.f32 %v144_v12, %v106_v15 }
  0xeb   :  { %124 = vst.msk [vmem:[%s227_s4] sm:$0xf] %vm123_vm2, %v139_v17  ;;  %v140_v19 = vpack.c.bf16 %v114_v18, %v114_v18 }
  0xed   :  { %125 = vst.msk [vmem:[%s227_s4 + $0x4] sm:$0xf] %vm123_vm2, %v140_v19 }

// kernel: gpt2_forward.14
= control target key start
LH: loop header
LB: loop body
LE: loop exit
PB: predicated region body
PF: predicated region fallthrough
CT: control target
= control target key end

     0   :  { %vm25_vm0 = vcmask 523264   ;;  %v276_v23 = vmov 0   ;;  %v82_v41 = vlaneseq  ;;  %s354_s0 = inlined_call_operand.vmem [shape: bf16[16,64], index: 0, kind: input, shape index: {}]   ;;  %s355_s3 = inlined_call_operand.vmem [shape: bf16[64,256], index: 3, kind: input, shape index: {}]   ;;  %s356_s1 = inlined_call_operand.vmem [shape: f32[1,64], index: 1, kind: input, shape index: {}]   ;;  %s357_s2 = inlined_call_operand.vmem [shape: f32[1,64], index: 2, kind: input, shape index: {}]   ;;  %s358_s4 = inlined_call_operand.vmem [shape: f32[1,256], index: 4, kind: input, shape index: {}]   ;;  %s359_s5 = inlined_call_operand.vmem [shape: bf16[16,256], index: 5, kind: output, shape index: {}]  }
   0x1   :  { %v248_v0 = vld [vmem:[%s354_s0] sm:$0xff]   ;;  %v255_v17 = vld [vmem:[%s355_s3 + $0x14] ss:$8 sps:$4 sm:$0xff]   ;;  %v257_v18 = vld [vmem:[%s355_s3 + $0x10] ss:$8 sps:$4 sm:$0xff]   ;;  %167 = vmatprep.mubr.bf16.mxu0 %v276_v23 }
   0x2   :  { %v249_v1 = vunpack.c.l.bf16 %v248_v0  ;;  %v250_v2 = vunpack.c.h.bf16 %v248_v0  ;;  %v252_v15 = vld [vmem:[%s355_s3 + $0x4] ss:$8 sps:$4 sm:$0xff]   ;;  %v254_v16 = vld [vmem:[%s355_s3] ss:$8 sps:$4 sm:$0xff]   ;;  %v261_v21 = vld [vmem:[%s355_s3 + $0x34] ss:$8 sps:$4 sm:$0xff]  }
   0x3   :  { %135 = vmatprep.subr.bf16.mxu0 %v252_v15  ;;  %v258_v19 = vld [vmem:[%s355_s3 + $0x24] ss:$8 sps:$4 sm:$0xff]   ;;  %v260_v20 = vld [vmem:[%s355_s3 + $0x20] ss:$8 sps:$4 sm:$0xff]   ;;  %v263_v22 = vld [vmem:[%s355_s3 + $0x30] ss:$8 sps:$4 sm:$0xff]  }
   0x4   :  { %v26_v3 = vsel %vm25_vm0, %v249_v1, 0.0  ;;  %v29_v4 = vsel %vm25_vm0, %v250_v2, 0.0  ;;  %136 = vmatpush1.bf16.msra.mxu0 %v254_v16  ;;  %v232_v32 = vld [vmem:[%s356_s1] ss:$0 sm:$0xff]  ;;  %v83_v42 = vshrl.u32 %v82_v41, 7 }
   0x5   :  { %27 = vadd.xlane.f32.xlu0 %v26_v3  ;;  %137 = vmatprep.subr.bf16.mxu0 %v255_v17  ;;  %v233_v36 = vld [vmem:[%s357_s2] ss:$0 sm:$0xff] }
   0x6   :  { %v84_v43 = vsub.s32 0, %v83_v42  ;;  %v80_v44 = vld [vmem:[%s358_s4] sm:$0x3]  ;;  %v88_v45 = vsub.s32 1, %v83_v42 }
   0x8   :  { %138 = vmatpush1.bf16.msra.mxu0 %v257_v18  ;;  %v85_v46 = vrot.slane %v80_v44, %v84_v43  ;;  %v89_v47 = vrot.slane %v80_v44, %v88_v45 }
   0x9   :  { %30 = vadd.xlane.f32.xlu0 %v29_v4  ;;  %139 = vmatprep.subr.bf16.mxu0 %v258_v19 }
   0xc   :  { %140 = vmatpush1.bf16.msra.mxu0 %v260_v20 }
   0xd   :  { %141 = vmatprep.subr.bf16.mxu0 %v261_v21 }
  0x10   :  { %142 = vmatpush1.bf16.msra.mxu0 %v263_v22 }
  0x92   :  { %v28_v5 = vpop.xlane.xlu0 %27 }
  0x93   :  { %v33_v6 = vmul.f32 0.015625, %v28_v5 }
  0x95   :  { %v35_v7 = vsub.f32 %v249_v1, %v33_v6 }
  0x96   :  { %v31_v8 = vpop.xlane.xlu0 %30 }
  0x97   :  { %v34_v9 = vmul.f32 0.015625, %v31_v8  ;;  %v37_v10 = vmul.f32 %v35_v7, %v35_v7 }
  0x99   :  { %v36_v11 = vsub.f32 %v250_v2, %v34_v9  ;;  %v39_v12 = vsel %vm25_vm0, %v37_v10, 0.0 }
  0x9a   :  { %40 = vadd.xlane.f32.xlu1 %v39_v12 }
  0x9b   :  { %v38_v13 = vmul.f32 %v36_v11, %v36_v11 }
  0x9d   :  { %v42_v14 = vsel %vm25_vm0, %v38_v13, 0.0 }
  0x9e   :  { %43 = vadd.xlane.f32.xlu1 %v42_v14 }
 0x127   :  { %v41_v24 = vpop.xlane.xlu1 %40 }
 0x128   :  { %v45_v25 = vmul.f32 0.015625, %v41_v24 }
 0x12a   :  { %v47_v26 = vadd.f32 1e-05, %v45_v25 }
 0x12b   :  { %v44_v27 = vpop.xlane.xlu1 %43 }
 0x12c   :  { %264 = vrsqrt.f32 %v47_v26  ;;  %v46_v28 = vmul.f32 0.015625, %v44_v27 }
 0x12e   :  { %v48_v29 = vadd.f32 1e-05, %v46_v28 }
 0x130   :  { %266 = vrsqrt.f32 %v48_v29 }
 0x136   :  { %v265_v30 = vpop.eup %264 }
 0x137   :  { %v51_v31 = vmul.f32 %v265_v30, %v35_v7 }
 0x139   :  { %v60_v35 = vmul.f32 %v232_v32, %v51_v31 }
 0x13a   :  { %v267_v33 = vpop.eup %266 }
 0x13b   :  { %v52_v34 = vmul.f32 %v267_v33, %v36_v11  ;;  %v69_v38 = vadd.f32 %v233_v36, %v60_v35 }
 0x13d   :  { %v61_v37 = vmul.f32 %v232_v32, %v52_v34 }
 0x13f   :  { %v70_v39 = vadd.f32 %v233_v36, %v61_v37 }
 0x141   :  { %v71_v40 = vpack.c.bf16 %v70_v39, %v69_v38 }
 0x143   :  { %242 = vmatmul.mubr.msk.bf16.vlgmr.msra.gmra.mrb[0].mxu0 %vm25_vm0, %v71_v40 }
 0x216   :  { %v169_v48 = vpop.f32.mrb[0].mxu0 }
 0x217   :  { %v170_v49 = vadd.f32 %v169_v48, %v85_v46  ;;  %v171_v50 = vpop.f32.mrb[1].mxu0 }
 0x218   :  { %v172_v51 = vadd.f32 %v171_v50, %v89_v47  ;;  %v173_v52 = vpop.f32.mrb[2].mxu0 }
 0x219   :  { %v182_v53 = vmul.f32 0.044715, %v170_v49  ;;  %v174_v54 = vadd.f32 %v173_v52, %v85_v46  ;;  %v175_v55 = vpop.f32.mrb[3].mxu0  ;;  %v178_v14 = vmul.f32 0.5, %v170_v49 }
 0x21a   :  { %v183_v56 = vmul.f32 0.044715, %v172_v51  ;;  %v176_v57 = vadd.f32 %v175_v55, %v89_v47  ;;  %v179_v17 = vmul.f32 0.5, %v172_v51 }
 0x21b   :  { %v186_v58 = vmul.f32 %v182_v53, %v170_v49  ;;  %v184_v59 = vmul.f32 0.044715, %v174_v54  ;;  %v180_v21 = vmul.f32 0.5, %v174_v54 }
 0x21c   :  { %v187_v60 = vmul.f32 %v183_v56, %v172_v51  ;;  %v185_v61 = vmul.f32 0.044715, %v176_v57  ;;  %v181_v24 = vmul.f32 0.5, %v176_v57 }
 0x21d   :  { %v190_v62 = vmul.f32 %v186_v58, %v170_v49  ;;  %v188_v63 = vmul.f32 %v184_v59, %v174_v54 }
 0x21e   :  { %v191_v0 = vmul.f32 %v187_v60, %v172_v51  ;;  %v189_v1 = vmul.f32 %v185_v61, %v176_v57 }
 0x21f   :  { %v194_v2 = vadd.f32 %v190_v62, %v170_v49  ;;  %v192_v3 = vmul.f32 %v188_v63, %v174_v54 }
 0x220   :  { %v195_v4 = vadd.f32 %v191_v0, %v172_v51  ;;  %v193_v5 = vmul.f32 %v189_v1, %v176_v57 }
 0x221   :  { %v198_v6 = vmul.f32 0.7978846, %v194_v2  ;;  %v196_v7 = vadd.f32 %v192_v3, %v174_v54 }
 0x222   :  { %v199_v8 = vmul.f32 0.7978846, %v195_v4  ;;  %v197_v9 = vadd.f32 %v193_v5, %v176_v57 }
 0x223   :  { %268 = vtanh.f32 %v198_v6  ;;  %v200_v10 = vmul.f32 0.7978846, %v196_v7 }
 0x224   :  { %270 = vtanh.f32 %v199_v8  ;;  %v201_v11 = vmul.f32 0.7978846, %v197_v9 }
 0x225   :  { %272 = vtanh.f32 %v200_v10 }
 0x226   :  { %274 = vtanh.f32 %v201_v11 }
 0x22d   :  { %v269_v12 = vpop.eup %268 }
 0x22e   :  { %v271_v13 = vpop.eup %270  ;;  %v206_v15 = vadd.f32 1.0, %v269_v12 }
 0x22f   :  { %v273_v16 = vpop.eup %272  ;;  %v207_v18 = vadd.f32 1.0, %v271_v13 }
 0x230   :  { %v275_v19 = vpop.eup %274  ;;  %v210_v20 = vmul.f32 %v206_v15, %v178_v14  ;;  %v208_v22 = vadd.f32 1.0, %v273_v16 }
 0x231   :  { %v211_v23 = vmul.f32 %v207_v18, %v179_v17  ;;  %v209_v25 = vadd.f32 1.0, %v275_v19 }
 0x232   :  { %v212_v26 = vmul.f32 %v208_v22, %v180_v21 }
 0x233   :  { %v245_v27 = vpack.c.bf16 %v211_v23, %v210_v20  ;;  %v213_v28 = vmul.f32 %v209_v25, %v181_v24 }
 0x235   :  { %226 = vst [vmem:[%s359_s5] sm:$0xff] %v245_v27  ;;  %v246_v29 = vpack.c.bf16 %v213_v28, %v212_v26 }
 0x237   :  { %227 = vst [vmem:[%s359_s5 + $0x8] sm:$0xff] %v246_v29 }

// kernel: gpt2_forward.12
= control target key start
LH: loop header
LB: loop body
LE: loop exit
PB: predicated region body
PF: predicated region fallthrough
CT: control target
= control target key end

     0   :  { %s794_s6 = smov 0   ;;  %s903_s0 = inlined_call_operand.vmem [shape: bf16[2,8,192], index: 0, kind: input, shape index: {}]   ;;  %s904_s1 = inlined_call_operand.vmem [shape: bf16[2,8,64], index: 1, kind: output, shape index: {}]  }
   0x1 LB: > { %s647_s7 = sadd.s32 4294967295, %s773_s6   ;;  %p651_p0 = scmp.ge.s32.totalorder %s773_s6, 1  ;;  %s773_s6 = sphi %s794_s6, %s11_s6  }
   0x2   : > { %p87_p1 = scmp.lt.s32.totalorder %s773_s6, 3 }
   0x4   : > { %p88_p2 = pnand %p651_p0, %p87_p1 }
   0x5   : > { %p106_p3 = scmp.lt.s32.totalorder (!%p88_p2), %s647_s7, 1  ;;  %v775_v0 = vmov (!%p88_p2), 0.0   ;;  %vm776_vm0 = vmmov (!%p88_p2), 0   ;;  %s777_s12 = smov (!%p88_p2), 64   ;;  %vm127_vm1 = vcmask (!%p88_p2), 130048   ;;  %v117_v5 = vlaneseq (!%p88_p2) }
   0x6   : > { %91 = sbr.rel (%p88_p2) target bundleno = 1559 (0x617), region = 24  ;;  %684 = vmatprep.subr.bf16.mxu0 (!%p88_p2), %v775_v0  ;;  %686 = vmatprep.mubr.msk.bf16.mxu0 (!%p88_p2), %vm776_vm0, %v775_v0  ;;  %s778_s13 = smov (!%p88_p2), 48   ;;  %vm176_vm3 = vcmask (!%p88_p2), 64512   ;;  %vm194_vm4 = vcmask (!%p88_p2), 1043456   ;;  %vm587_vm5 = vcmask (!%p88_p2), 261120   ;;  %vm589_vm6 = vcmask (!%p88_p2), 392192  }
   0x7   : > { %690 = vmatprep.subr.bf16.mxu1 (!%p88_p2), %v775_v0  ;;  %692 = vmatprep.mubr.msk.bf16.mxu1 (!%p88_p2), %vm776_vm0, %v775_v0  ;;  %v820_v6 = vshrl.u32 (!%p88_p2), %v117_v5, 7  ;;  %v822_v7 = vand.u32 (!%p88_p2), 127, %v117_v5  ;;  %s779_s14 = smov (!%p88_p2), 80   ;;  %s780_s15 = smov (!%p88_p2), 112   ;;  %vm592_vm7 = vcmask (!%p88_p2), 519168  }
   0x8   : > { %s781_s16 = smov (!%p88_p2), 32   ;;  %s782_s17 = smov (!%p88_p2), 96  }
   0x9   : > { %vm121_vm2 = vcmp.le.s32.totalorder (!%p88_p2), %v822_v7, %v820_v6  ;;  %s783_s18 = smov (!%p88_p2), 16  }
   0xd   : > { %s906_s7 = smov (!%p106_p3, %s647_s7), 1 }
   0xe   : > { %s667_s8 = sshll.u32 %s906_s7, 3  ;;  %s654_s19 = sshll.u32 %s906_s7, 2 }
   0xf   : > { %s110_s11 = scalar_lea.vmem %s903_s0, %s667_s8  ;;  %s114_s22 = scalar_lea.vmem %s904_s1, %s654_s19 }
  0x10   : > { %v116_v1 = vld [vmem:[%s110_s11] sm:$0xff] }
  0x11   : > { %v655_v2 = vcombine.low %v116_v1, %v116_v1  ;;  %v832_v20 = vcombine.high %v116_v1, %v116_v1 }
  0x13   : > { %125 = vrot.lane.b32.xlu0 %v655_v2, %s777_s12  ;;  %240 = vrot.lane.b32.xlu1 %v655_v2, %s778_s13  ;;  %v196_v21 = vsel %vm194_vm4, %v832_v20, 0 }
  0x14   : > { %691 = vmatpush3.bf16.msra.mxu1 %v196_v21 }
  0x15   : > { %696 = vmatprep.subr.bf16.mxu1 %v775_v0 }
  0x85   : > { %v126_v3 = vpop.permute.xlu0 %125  ;;  %v241_v22 = vpop.permute.xlu1 %240 }
  0x86   : > { %v132_v4 = vsel %vm127_vm1, %v126_v3, 0  ;;  %v246_v29 = vsel %vm127_vm1, %v241_v22, 0 }
  0x87   : > { %685 = vmatpush3.bf16.xpose.msra.mxu0 %v132_v4 }
  0x88   : > { %702 = vmatprep.subr.bf16.mxu0 %v775_v0 }
  0x8e   : > { %687 = vmatmul.mubr.msk.bf16.vlgmr.msra.gmra.mrb[0].mxu0 %vm127_vm1, %v116_v1 }
  0x8f   : > { %704 = vmatprep.mubr.msk.bf16.mxu0 %vm776_vm0, %v775_v0 }
 0x161   : > { %v168_v8 = vpop.f32.mrb[0].mxu0 }
 0x162   : > { %v174_v9 = vmul.f32 0.25, %v168_v8  ;;  %v688_v10 = vpop.f32.mrb[1].mxu0 }
 0x163   : > { %v171_v11 = vpop.f32.mrb[2].mxu0 }
 0x164   : > { %v689_v12 = vpop.f32.mrb[3].mxu0  ;;  %v175_v13 = vsel %vm121_vm2, %v174_v9, -1e+30 }
 0x165   : > { %v177_v14 = vsel %vm176_vm3, %v175_v13, -inf }
 0x166   : > { %178 = vmax.xlane.f32.xlu0 %v177_v14 }
 0x17c   : > { %462 = vrot.lane.b32.xlu0 %v655_v2, %s779_s14 }
 0x1f3   : > { %v179_v15 = vpop.xlane.xlu0 %178 }
 0x1f4   : > { %v180_v16 = vsub.f32 %v175_v13, %v179_v15 }
 0x1f6   : > { %v181_v17 = vmul.f32 1.442695, %v180_v16 }
 0x1f7   : > { %v463_v34 = vpop.permute.xlu0 %462 }
 0x1f8   : > { %751 = vpow2.f32 %v181_v17 }
 0x202   : > { %v752_v18 = vpop.eup %751 }
 0x203   : > { %v183_v19 = vsel %vm176_vm3, %v752_v18, 0.0 }
 0x204   : > { %184 = vadd.xlane.f32.xlu1 %v183_v19 }
 0x215   : > { %238 = vrot.lane.b32.xlu1 %v655_v2, %s780_s15 }
 0x219   : > { %352 = vrot.lane.b32.xlu1 %v655_v2, %s781_s16 }
 0x21d   : > { %350 = vrot.lane.b32.xlu1 %v655_v2, %s782_s17 }
 0x221   : > { %464 = vrot.lane.b32.xlu1 %v655_v2, %s783_s18 }
 0x291   : > { %v185_v23 = vpop.xlane.xlu1 %184 }
 0x292   : > { %753 = vrcp.f32 %v185_v23 }
 0x295   : > { %v239_v24 = vpop.permute.xlu1 %238 }
 0x299   : > { %v353_v28 = vpop.permute.xlu1 %352 }
 0x29a   : > { %v358_v31 = vsel %vm127_vm1, %v353_v28, 0 }
 0x29c   : > { %v754_v25 = vpop.eup %753 }
 0x29d   : > { %v187_v26 = vmul.f32 %v754_v25, %v752_v18  ;;  %v351_v30 = vpop.permute.xlu1 %350 }
 0x29f   : > { %v188_v27 = vpack.c.bf16 %v187_v26, %v187_v26 }
 0x2a1   : > { %693 = vmatmul.mubr.msk.bf16.vlgmr.msra.gmra.mrb[0].mxu1 %vm176_vm3, %v188_v27  ;;  %v465_v32 = vpop.permute.xlu1 %464 }
 0x2a2   : > { %697 = vmatpush3.bf16.xpose.msra.mxu1 %v246_v29  ;;  %698 = vmatprep.mubr.msk.bf16.mxu1 %vm776_vm0, %v775_v0  ;;  %v470_v33 = vsel %vm127_vm1, %v465_v32, 0 }
 0x2a3   : > { %708 = vmatprep.subr.bf16.mxu1 %v775_v0 }
 0x2a9   : > { %699 = vmatmul.mubr.msk.bf16.vlgmr.msra.gmra.mrb[4].mxu1 %vm127_vm1, %v239_v24 }
 0x2aa   : > { %709 = vmatpush3.bf16.xpose.msra.mxu1 %v358_v31  ;;  %710 = vmatprep.mubr.msk.bf16.mxu1 %vm776_vm0, %v775_v0 }
 0x2ab   : > { %720 = vmatprep.subr.bf16.mxu1 %v775_v0 }
 0x2b1   : > { %711 = vmatmul.mubr.msk.bf16.vlgmr.msra.gmra.mrb[8].mxu1 %vm127_vm1, %v351_v30 }
 0x2b2   : > { %721 = vmatpush3.bf16.xpose.msra.mxu1 %v470_v33  ;;  %722 = vmatprep.mubr.msk.bf16.mxu1 %vm776_vm0, %v775_v0 }
 0x2b9   : > { %723 = vmatmul.mubr.msk.bf16.vlgmr.msra.gmra.mrb[12].mxu1 %vm127_vm1, %v463_v34 }
 0x374   : > { %v856_v35 = vpop.f32.mrb[0].mxu1 }
 0x375   : > { %v694_v36 = vpop.f32.mrb[1].mxu1 }
 0x376   : > { %v235_v37 = vpop.f32.mrb[2].mxu1 }
 0x377   : > { %v695_v38 = vpop.f32.mrb[3].mxu1 }
 0x37c   : > { %v282_v39 = vpop.f32.mrb[4].mxu1 }
 0x37d   : > { %v288_v40 = vmul.f32 0.25, %v282_v39  ;;  %v700_v41 = vpop.f32.mrb[5].mxu1 }
 0x37e   : > { %v285_v42 = vpop.f32.mrb[6].mxu1 }
 0x37f   : > { %v701_v43 = vpop.f32.mrb[7].mxu1  ;;  %v289_v44 = vsel %vm121_vm2, %v288_v40, -1e+30 }
 0x380   : > { %v290_v45 = vsel %vm176_vm3, %v289_v44, -inf }
 0x381   : > { %291 = vmax.xlane.f32.xlu1 %v290_v45 }
 0x384   : > { %v394_v46 = vpop.f32.mrb[8].mxu1 }
 0x385   : > { %v400_v47 = vmul.f32 0.25, %v394_v46  ;;  %v712_v48 = vpop.f32.mrb[9].mxu1 }
 0x386   : > { %v397_v49 = vpop.f32.mrb[10].mxu1 }
 0x387   : > { %v713_v50 = vpop.f32.mrb[11].mxu1  ;;  %v401_v51 = vsel %vm121_vm2, %v400_v47, -1e+30 }
 0x388   : > { %v402_v52 = vsel %vm176_vm3, %v401_v51, -inf }
 0x389   : > { %403 = vmax.xlane.f32.xlu0 %v402_v52 }
 0x38c   : > { %v506_v53 = vpop.f32.mrb[12].mxu1 }
 0x38d   : > { %v512_v54 = vmul.f32 0.25, %v506_v53  ;;  %v724_v55 = vpop.f32.mrb[13].mxu1 }
 0x38e   : > { %v509_v56 = vpop.f32.mrb[14].mxu1 }
 0x38f   : > { %v725_v57 = vpop.f32.mrb[15].mxu1  ;;  %v513_v58 = vsel %vm121_vm2, %v512_v54, -1e+30 }
 0x390   : > { %v514_v59 = vsel %vm176_vm3, %v513_v58, -inf }
 0x391   : > { %515 = vmax.xlane.f32.xlu1 %v514_v59 }
 0x39f   : > { %302 = vrot.lane.b32.xlu0 %v832_v20, %s780_s15 }
 0x3a2   : > { %414 = vrot.lane.b32.xlu1 %v832_v20, %s782_s17 }
 0x40e   : > { %v292_v60 = vpop.xlane.xlu1 %291 }
 0x40f   : > { %v293_v61 = vsub.f32 %v289_v44, %v292_v60 }
 0x411   : > { %v294_v62 = vmul.f32 1.442695, %v293_v61 }
 0x413   : > { %755 = vpow2.f32 %v294_v62 }
 0x416   : > { %v404_v63 = vpop.xlane.xlu0 %403 }
 0x417   : > { %v405_v1 = vsub.f32 %v401_v51, %v404_v63 }
 0x419   : > { %v406_v2 = vmul.f32 1.442695, %v405_v1 }
 0x41a   : > { %v303_v12 = vpop.permute.xlu0 %302 }
 0x41b   : > { %757 = vpow2.f32 %v406_v2  ;;  %v308_v13 = vsel %vm194_vm4, %v303_v12, 0 }
 0x41c   : > { %703 = vmatpush3.bf16.msra.mxu0 %v308_v13 }
 0x41d   : > { %v756_v3 = vpop.eup %755  ;;  %714 = vmatprep.subr.bf16.mxu0 %v775_v0 }
 0x41e   : > { %v516_v4 = vpop.xlane.xlu1 %515  ;;  %v296_v5 = vsel %vm176_vm3, %v756_v3, 0.0 }
 0x41f   : > { %v517_v6 = vsub.f32 %v513_v58, %v516_v4  ;;  %297 = vadd.xlane.f32.xlu1 %v296_v5 }
 0x421   : > { %v518_v7 = vmul.f32 1.442695, %v517_v6 }
 0x422   : > { %v415_v14 = vpop.permute.xlu1 %414 }
 0x423   : > { %759 = vpow2.f32 %v518_v7  ;;  %v420_v21 = vsel %vm194_vm4, %v415_v14, 0 }
 0x425   : > { %v758_v8 = vpop.eup %757 }
 0x426   : > { %v408_v9 = vsel %vm176_vm3, %v758_v8, 0.0 }
 0x427   : > { %409 = vadd.xlane.f32.xlu1 %v408_v9 }
 0x42d   : > { %v760_v10 = vpop.eup %759 }
 0x42e   : > { %v520_v11 = vsel %vm176_vm3, %v760_v10, 0.0 }
 0x42f   : > { %521 = vadd.xlane.f32.xlu1 %v520_v11 }
 0x440   : > { %526 = vrot.lane.b32.xlu1 %v832_v20, %s779_s14 }
 0x4ac   : > { %v298_v15 = vpop.xlane.xlu1 %297 }
 0x4ad   : > { %761 = vrcp.f32 %v298_v15 }
 0x4b4   : > { %v410_v16 = vpop.xlane.xlu1 %409 }
 0x4b5   : > { %763 = vrcp.f32 %v410_v16 }
 0x4b7   : > { %v762_v17 = vpop.eup %761 }
 0x4b8   : > { %v300_v18 = vmul.f32 %v762_v17, %v756_v3 }
 0x4ba   : > { %v301_v19 = vpack.c.bf16 %v300_v18, %v300_v18 }
 0x4bc   : > { %v522_v22 = vpop.xlane.xlu1 %521  ;;  %705 = vmatmul.mubr.msk.bf16.vlgmr.msra.gmra.mrb[4].mxu0 %vm176_vm3, %v301_v19 }
 0x4bd   : > { %765 = vrcp.f32 %v522_v22  ;;  %715 = vmatpush3.bf16.msra.mxu0 %v420_v21  ;;  %716 = vmatprep.mubr.msk.bf16.mxu0 %vm776_vm0, %v775_v0 }
 0x4be   : > { %726 = vmatprep.subr.bf16.mxu0 %v775_v0 }
 0x4bf   : > { %v764_v20 = vpop.eup %763 }
 0x4c0   : > { %v412_v23 = vmul.f32 %v764_v20, %v758_v8  ;;  %v527_v24 = vpop.permute.xlu1 %526 }
 0x4c1   : > { %v532_v25 = vsel %vm194_vm4, %v527_v24, 0 }
 0x4c2   : > { %v413_v26 = vpack.c.bf16 %v412_v23, %v412_v23 }
 0x4c4   : > { %717 = vmatmul.mubr.msk.bf16.vlgmr.msra.gmra.mrb[8].mxu0 %vm176_vm3, %v413_v26 }
 0x4c5   : > { %727 = vmatpush3.bf16.msra.mxu0 %v532_v25  ;;  %728 = vmatprep.mubr.msk.bf16.mxu0 %vm776_vm0, %v775_v0 }
 0x4c7   : > { %v766_v27 = vpop.eup %765 }
 0x4c8   : > { %v524_v28 = vmul.f32 %v766_v27, %v760_v10 }
 0x4ca   : > { %v525_v29 = vpack.c.bf16 %v524_v28, %v524_v28 }
 0x4cc   : > { %729 = vmatmul.mubr.msk.bf16.vlgmr.msra.gmra.mrb[12].mxu0 %vm176_vm3, %v525_v29 }
 0x58f   : > { %v344_v30 = vpop.f32.mrb[4].mxu0 }
 0x590   : > { %575 = vrot.lane.b32.xlu0 %v344_v30, %s783_s18  ;;  %v706_v31 = vpop.f32.mrb[5].mxu0 }
 0x591   : > { %v347_v32 = vpop.f32.mrb[6].mxu0 }
 0x592   : > { %v707_v33 = vpop.f32.mrb[7].mxu0 }
 0x597   : > { %v456_v34 = vpop.f32.mrb[8].mxu0 }
 0x598   : > { %579 = vrot.lane.b32.xlu1 %v456_v34, %s781_s16  ;;  %v718_v36 = vpop.f32.mrb[9].mxu0 }
 0x599   : > { %v459_v37 = vpop.f32.mrb[10].mxu0 }
 0x59a   : > { %v719_v38 = vpop.f32.mrb[11].mxu0 }
 0x59f   : > { %v568_v39 = vpop.f32.mrb[12].mxu0 }
 0x5a0   : > { %583 = vrot.lane.b32.xlu0 %v568_v39, %s778_s13  ;;  %v730_v0 = vpop.f32.mrb[13].mxu0 }
 0x5a1   : > { %v571_v40 = vpop.f32.mrb[14].mxu0 }
 0x5a2   : > { %v731_v41 = vpop.f32.mrb[15].mxu0 }
 0x602   : > { %v576_v42 = vpop.permute.xlu0 %575 }
 0x603   : > { %v586_v44 = vsel %vm127_vm1, %v856_v35, %v576_v42 }
 0x60a   : > { %v580_v43 = vpop.permute.xlu1 %579 }
 0x60b   : > { %v588_v45 = vsel %vm587_vm5, %v586_v44, %v580_v43 }
 0x612   : > { %v584_v46 = vpop.permute.xlu0 %583 }
 0x613   : > { %v590_v47 = vsel %vm589_vm6, %v588_v45, %v584_v46 }
 0x614   : > { %v591_v48 = vpack.c.bf16 %v590_v47, %v590_v47 }
 0x616   : > { %593 = vst.msk [vmem:[%s114_s22] sm:$0xf] %vm592_vm7, %v591_v48 }
 0x617 PF: > { %s11_s6 = sadd.s32 1, %s773_s6  }
 0x618   : > { %p8_p4 = scmp.ge.s32.totalorder %s11_s6, 4  }
 0x61a   :  { %10 = sbr.rel (!%p8_p4) target bundleno = 1 (0x1), region = 54 }

// kernel: gpt2_forward.15
= control target key start
LH: loop header
LB: loop body
LE: loop exit
PB: predicated region body
PF: predicated region fallthrough
CT: control target
= control target key end

     0   :  { %vm220_vm0 = vcmask 519168   ;;  %s386_s1 = inlined_call_operand.vmem [shape: bf16[256,64], index: 1, kind: input, shape index: {}]   ;;  %s387_s0 = inlined_call_operand.vmem [shape: bf16[16,256], index: 0, kind: input, shape index: {}]   ;;  %s388_s3 = inlined_call_operand.vmem [shape: bf16[16,64], index: 3, kind: input, shape index: {}]   ;;  %s389_s2 = inlined_call_operand.vmem [shape: f32[1,64], index: 2, kind: input, shape index: {}]   ;;  %s390_s4 = inlined_call_operand.vmem [shape: bf16[16,64], index: 4, kind: output, shape index: {}]  }
   0x1   :  { %v276_v0 = vld [vmem:[%s386_s1 + $0x40] sm:$0xff]   ;;  %v278_v2 = vld [vmem:[%s386_s1 + $0x48] sm:$0xff]   ;;  %v280_v4 = vld [vmem:[%s386_s1 + $0x50] sm:$0xff]  }
   0x2   :  { %v277_v1 = vld [vmem:[%s386_s1] sm:$0xff]   ;;  %254 = vmatprep.subr.bf16.mxu0 %v276_v0  ;;  %v279_v3 = vld [vmem:[%s386_s1 + $0x8] sm:$0xff]   ;;  %v281_v5 = vld [vmem:[%s386_s1 + $0x10] sm:$0xff]  }
   0x3   :  { %255 = vmatpush3.bf16.msra.mxu0 %v277_v1  ;;  %v282_v6 = vld [vmem:[%s386_s1 + $0x58] sm:$0xff]   ;;  %v284_v8 = vld [vmem:[%s386_s1 + $0x60] sm:$0xff]   ;;  %v286_v10 = vld [vmem:[%s386_s1 + $0x68] sm:$0xff]  }
   0x4   :  { %256 = vmatprep.subr.bf16.mxu0 %v278_v2  ;;  %v283_v7 = vld [vmem:[%s386_s1 + $0x18] sm:$0xff]   ;;  %v285_v9 = vld [vmem:[%s386_s1 + $0x20] sm:$0xff]   ;;  %v287_v12 = vld [vmem:[%s386_s1 + $0x28] sm:$0xff]  }
   0x5   :  { %v294_v11 = vld [vmem:[%s387_s0 + $0x4] ss:$8 sps:$4 sm:$0xff]   ;;  %v288_v13 = vld [vmem:[%s386_s1 + $0x70] sm:$0xff]   ;;  %v290_v15 = vld [vmem:[%s386_s1 + $0x78] sm:$0xff]  }
   0x6   :  { %197 = vmatprep.mubr.bf16.mxu0 %v294_v11  ;;  %v289_v14 = vld [vmem:[%s386_s1 + $0x30] sm:$0xff]   ;;  %v291_v16 = vld [vmem:[%s386_s1 + $0x38] sm:$0xff]   ;;  %v292_v17 = vld [vmem:[%s387_s0] ss:$8 sps:$4 sm:$0xff]  }
   0x7   :  { %257 = vmatpush3.bf16.msra.mxu0 %v279_v3  ;;  %v251_v18 = vld [vmem:[%s388_s3] sm:$0xff]  }
   0x8   :  { %258 = vmatprep.subr.bf16.mxu0 %v280_v4  ;;  %v227_v20 = vld [vmem:[%s389_s2] ss:$0 sm:$0xff]  ;;  %v252_v23 = vunpack.c.l.bf16 %v251_v18  ;;  %v253_v28 = vunpack.c.h.bf16 %v251_v18 }
   0xb   :  { %259 = vmatpush3.bf16.msra.mxu0 %v281_v5 }
   0xc   :  { %260 = vmatprep.subr.bf16.mxu0 %v282_v6 }
   0xf   :  { %261 = vmatpush3.bf16.msra.mxu0 %v283_v7 }
  0x10   :  { %262 = vmatprep.subr.bf16.mxu0 %v284_v8 }
  0x13   :  { %263 = vmatpush3.bf16.msra.mxu0 %v285_v9 }
  0x14   :  { %264 = vmatprep.subr.bf16.mxu0 %v286_v10 }
  0x17   :  { %265 = vmatpush3.bf16.msra.mxu0 %v287_v12 }
  0x18   :  { %266 = vmatprep.subr.bf16.mxu0 %v288_v13 }
  0x1b   :  { %267 = vmatpush3.bf16.msra.mxu0 %v289_v14 }
  0x1c   :  { %268 = vmatprep.subr.bf16.mxu0 %v290_v15 }
  0x1f   :  { %269 = vmatpush3.bf16.msra.mxu0 %v291_v16 }
  0x22   :  { %198 = vmatmul.mubr.bf16.vlgmr.msra.gmra.mrb[0].mxu0 %v292_v17 }
  0xf5   :  { %v270_v19 = vpop.f32.mrb[0].mxu0 }
  0xf6   :  { %v271_v21 = vpop.f32.mrb[1].mxu0 }
  0xf7   :  { %v272_v22 = vadd.f32 %v271_v21, %v270_v19  ;;  %v273_v24 = vpop.f32.mrb[2].mxu0 }
  0xf8   :  { %v274_v25 = vpop.f32.mrb[3].mxu0 }
  0xf9   :  { %v200_v26 = vadd.f32 %v272_v22, %v227_v20  ;;  %v275_v27 = vadd.f32 %v274_v25, %v273_v24 }
  0xfb   :  { %v210_v29 = vadd.f32 %v252_v23, %v200_v26  ;;  %v203_v30 = vadd.f32 %v275_v27, %v227_v20 }
  0xfd   :  { %v248_v31 = vpack.c.bf16 %v210_v29, %v210_v29  ;;  %v211_v32 = vadd.f32 %v253_v28, %v203_v30 }
  0xff   :  { %221 = vst.msk [vmem:[%s390_s4] sm:$0xf] %vm220_vm0, %v248_v31  ;;  %v249_v33 = vpack.c.bf16 %v211_v32, %v211_v32 }
 0x101   :  { %222 = vst.msk [vmem:[%s390_s4 + $0x4] sm:$0xf] %vm220_vm0, %v249_v33 }

// kernel: gpt2_forward.21
= control target key start
LH: loop header
LB: loop body
LE: loop exit
PB: predicated region body
PF: predicated region fallthrough
CT: control target
= control target key end

     0   :  { %s780_s18 = smov 0   ;;  %s782_s19 = smov 0   ;;  %s875_s0 = inlined_call_operand.vmem [shape: bf16[16,64], index: 0, kind: input, shape index: {}]   ;;  %s876_s1 = inlined_call_operand.vmem [shape: f32[1,64], index: 1, kind: input, shape index: {}]   ;;  %s877_s2 = inlined_call_operand.vmem [shape: f32[1,64], index: 2, kind: input, shape index: {}]   ;;  %s878_s3 = inlined_call_operand.vmem [shape: bf16[64,640], index: 3, kind: input, shape index: {}]   ;;  %s879_s4 = inlined_call_operand.vmem [shape: f32[1,640], index: 4, kind: input, shape index: {}]   ;;  %s880_s5 = inlined_call_operand.vmem [shape: f32[16,640], index: 5, kind: output, shape index: {}]  }
   0x1   :  { %s784_s20 = smov 0   ;;  %s786_s21 = smov 0  }
   0x2   :  { %s788_s22 = smov 0  }
   0x3 LB: > { %s24_s23 = sadd.s32 1, %s742_s21  ;;  %s615_s24 = sadd.s32 4294967295, %s746_s22   ;;  %s746_s22 = sphi %s788_s22, %s15_s22   ;;  %s742_s21 = sphi %s786_s21, %s885_s21   ;;  %s738_s20 = sphi %s784_s20, %s884_s20   ;;  %s734_s19 = sphi %s782_s19, %s883_s19   ;;  %s730_s18 = sphi %s780_s18, %s882_s18  }
   0x4   : > { %p25_p0 = scmp.ge.s32.totalorder %s24_s23, 5  ;;  %p109_p1 = scmp.ne.s32.totalorder %s734_s19, %s730_s18 }
   0x5   : > { %p110_p2 = scmp.eq.s32.totalorder %s746_s22, 0  ;;  %p167_p4 = scmp.eq.s32.totalorder %s615_s24, 4 }
   0x6   : > { %s887_s23 = smov (%p25_p0, %s24_s23), 0  ;;  %s102_s26 = sadd.s32 1, %s734_s19 }
   0x7   : > { %p111_p3 = por %p110_p2, %p109_p1  ;;  %s99_s25 = ssub.s32 %s742_s21, %s887_s23 }
   0x8   : > { %p100_p5 = scmp.eq.s32.totalorder %s99_s25, 0  ;;  %p815_p6 = por %p167_p4, %p109_p1 }
   0x9   : > { %p619_p7 = scmp.ge.s32.totalorder %s746_s22, 5 }
   0xa   : > { %s820_s28 = scalar_select %p100_p5, %s734_s19, %s102_s26  }
   0xb   : > { %204 = sbr.rel (%p619_p7) target bundleno = 27 (0x1b), region = 28 }
  0x12   : > { %207 = sbr.rel (!%p111_p3) target bundleno = 27 (0x1b), region = 32  ;;  %s209_s29 = sand.u32 (%p111_p3), 1, %s734_s19  }
  0x13   : > { %s621_s30 = sshll.u32 (%p111_p3), %s742_s21, 2  ;;  %s620_s6 = sshll.u32 (%p111_p3), %s209_s29, 5 }
  0x14   : > { %s213_s9 = scalar_lea.vmem (%p111_p3), %s878_s3, %s621_s30  ;;  %s211_s10 = scalar_lea.vmem (%p111_p3), [#allocation2], %s620_s6 }
  0x15   : > { %v229_v0 = vld [vmem:[%s213_s9] sm:$0xf] (%p111_p3)  ;;  %v231_v1 = vld [vmem:[%s213_s9 + $0x14] sm:$0xf] (%p111_p3)  ;;  %v233_v2 = vld [vmem:[%s213_s9 + $0x28] sm:$0xf] (%p111_p3) }
  0x16   : > { %230 = vst [vmem:[%s211_s10] sm:$0xf] (%p111_p3), %v229_v0  ;;  %232 = vst [vmem:[%s211_s10 + $0x4] sm:$0xf] (%p111_p3), %v231_v1  ;;  %v235_v3 = vld [vmem:[%s213_s9 + $0x3c] sm:$0xf] (%p111_p3) }
  0x17   : > { %v237_v4 = vld [vmem:[%s213_s9 + $0x50] sm:$0xf] (%p111_p3)  ;;  %234 = vst [vmem:[%s211_s10 + $0x8] sm:$0xf] (%p111_p3), %v233_v2  ;;  %236 = vst [vmem:[%s211_s10 + $0xc] sm:$0xf] (%p111_p3), %v235_v3 }
  0x18   : > { %238 = vst [vmem:[%s211_s10 + $0x10] sm:$0xf] (%p111_p3), %v237_v4  ;;  %v239_v5 = vld [vmem:[%s213_s9 + $0x64] sm:$0xf] (%p111_p3)  ;;  %v241_v6 = vld [vmem:[%s213_s9 + $0x78] sm:$0xf] (%p111_p3) }
  0x19   : > { %v243_v7 = vld [vmem:[%s213_s9 + $0x8c] sm:$0xf]  ;;  %240 = vst [vmem:[%s211_s10 + $0x14] sm:$0xf] %v239_v5  ;;  %242 = vst [vmem:[%s211_s10 + $0x18] sm:$0xf] %v241_v6 }
  0x1a   : > { %244 = vst [vmem:[%s211_s10 + $0x1c] sm:$0xf] %v243_v7 }
  0x1b PF: > { %p622_p8 = scmp.ge.s32.totalorder %s746_s22, 1  ;;  %p288_p9 = scmp.lt.s32.totalorder %s746_s22, 6 }
  0x1d   : > { %p289_p10 = pnand %p622_p8, %p288_p9 }
  0x1e   : > { %v638_v8 = vld [vmem:[%s875_s0] sm:$0xff] (!%p289_p10)   ;;  %vm344_vm0 = vcmask (!%p289_p10), 523264   ;;  %s295_s13 = sand.u32 (!%p289_p10), 1, %s730_s18   ;;  %v748_v24 = vmov (!%p289_p10), 0.0   ;;  %vm749_vm1 = vmmov (!%p289_p10), 0   ;;  %p335_p11 = scmp.lt.s32.totalorder (!%p289_p10), %s738_s20, 4 }
  0x1f   : > { %292 = sbr.rel (%p289_p10) target bundleno = 577 (0x241), region = 77  ;;  %v639_v9 = vunpack.c.l.bf16 (!%p289_p10), %v638_v8  ;;  %v640_v10 = vunpack.c.h.bf16 (!%p289_p10), %v638_v8  ;;  %s623_s14 = sshll.u32 (!%p289_p10), %s295_s13, 5  ;;  %646 = vmatprep.subr.bf16.mxu0 (!%p289_p10), %v748_v24  ;;  %654 = vmatprep.mubr.msk.bf16.mxu0 (!%p289_p10), %vm749_vm1, %v748_v24  ;;  %v625_v36 = vld [vmem:[%s876_s1] ss:$0 sm:$0xff] (!%p289_p10) }
  0x20   : > { %s297_s15 = scalar_lea.vmem (!%p289_p10), [#allocation2], %s623_s14  ;;  %v626_v40 = vld [vmem:[%s877_s2] ss:$0 sm:$0xff] (!%p289_p10)  ;;  %s624_s7 = sshll.u32 (!%p289_p10), %s295_s13, 4 }
  0x21   : > { %v345_v11 = vsel (!%p289_p10), %vm344_vm0, %v639_v9, 0.0  ;;  %v348_v12 = vsel (!%p289_p10), %vm344_vm0, %v640_v10, 0.0  ;;  %v700_v23 = vld [vmem:[%s297_s15] sm:$0xff] (!%p289_p10)   ;;  %v701_v25 = vld [vmem:[%s297_s15 + $0x8] sm:$0xff] (!%p289_p10)   ;;  %v702_v26 = vld [vmem:[%s297_s15 + $0x10] sm:$0xff] (!%p289_p10)   ;;  %s328_s8 = scalar_lea.vmem (!%p289_p10), [#allocation3], %s624_s7 }
  0x22   : > { %346 = vadd.xlane.f32.xlu0 (!%p289_p10), %v345_v11  ;;  %647 = vmatpush3.bf16.msra.mxu0 (!%p289_p10), %v700_v23  ;;  %v703_v27 = vld [vmem:[%s297_s15 + $0x18] sm:$0xff] (!%p289_p10)  }
  0x23   : > { %648 = vmatprep.subr.bf16.mxu0 (!%p289_p10), %v748_v24 }
  0x26   : > { %349 = vadd.xlane.f32.xlu0 %v348_v12  ;;  %649 = vmatpush3.bf16.msra.mxu0 %v701_v25  ;;  %s336_s26 = scalar_select %p335_p11, %s738_s20, 4 }
  0x27   : > { %650 = vmatprep.subr.bf16.mxu0 %v748_v24  ;;  %s634_s9 = sshll.u32 (%p815_p6), %s738_s20, 3 }
  0x28   : > { %s337_s6 = scalar_lea.vmem %s879_s4, %s336_s26  ;;  %s487_s11 = scalar_lea.vmem (%p815_p6), %s880_s5, %s634_s9 }
  0x29   : > { %v627_v45 = vld [vmem:[%s337_s6] ss:$0 sm:$0xff] }
  0x2a   : > { %651 = vmatpush3.bf16.msra.mxu0 %v702_v26 }
  0x2b   : > { %652 = vmatprep.subr.bf16.mxu0 %v748_v24 }
  0x2e   : > { %653 = vmatpush3.bf16.msra.mxu0 %v703_v27 }
  0xaf   : > { %v347_v13 = vpop.xlane.xlu0 %346 }
  0xb0   : > { %v352_v14 = vmul.f32 0.015625, %v347_v13 }
  0xb2   : > { %v354_v15 = vsub.f32 %v639_v9, %v352_v14 }
  0xb3   : > { %v350_v16 = vpop.xlane.xlu0 %349 }
  0xb4   : > { %v353_v17 = vmul.f32 0.015625, %v350_v16  ;;  %v356_v18 = vmul.f32 %v354_v15, %v354_v15 }
  0xb6   : > { %v355_v19 = vsub.f32 %v640_v10, %v353_v17  ;;  %v358_v20 = vsel %vm344_vm0, %v356_v18, 0.0 }
  0xb7   : > { %359 = vadd.xlane.f32.xlu1 %v358_v20 }
  0xb8   : > { %v357_v21 = vmul.f32 %v355_v19, %v355_v19 }
  0xba   : > { %v361_v22 = vsel %vm344_vm0, %v357_v21, 0.0 }
  0xbb   : > { %362 = vadd.xlane.f32.xlu1 %v361_v22 }
 0x144   : > { %v360_v28 = vpop.xlane.xlu1 %359 }
 0x145   : > { %v364_v29 = vmul.f32 0.015625, %v360_v28 }
 0x147   : > { %v366_v30 = vadd.f32 1e-05, %v364_v29 }
 0x148   : > { %v363_v31 = vpop.xlane.xlu1 %362 }
 0x149   : > { %704 = vrsqrt.f32 %v366_v30  ;;  %v365_v32 = vmul.f32 0.015625, %v363_v31 }
 0x14b   : > { %v367_v33 = vadd.f32 1e-05, %v365_v32 }
 0x14d   : > { %706 = vrsqrt.f32 %v367_v33 }
 0x153   : > { %v705_v34 = vpop.eup %704 }
 0x154   : > { %v370_v35 = vmul.f32 %v705_v34, %v354_v15 }
 0x156   : > { %v379_v39 = vmul.f32 %v625_v36, %v370_v35 }
 0x157   : > { %v707_v37 = vpop.eup %706 }
 0x158   : > { %v371_v38 = vmul.f32 %v707_v37, %v355_v19  ;;  %v388_v42 = vadd.f32 %v626_v40, %v379_v39 }
 0x15a   : > { %v380_v41 = vmul.f32 %v625_v36, %v371_v38 }
 0x15c   : > { %v389_v43 = vadd.f32 %v626_v40, %v380_v41 }
 0x15e   : > { %v390_v44 = vpack.c.bf16 %v389_v43, %v388_v42 }
 0x160   : > { %655 = vmatmul.mubr.msk.bf16.vlgmr.msra.gmra.mrb[0].mxu0 %vm344_vm0, %v390_v44 }
 0x232   : > { %482 = sbr.rel (!%p815_p6) target bundleno = 577 (0x241), region = 85 }
 0x233   : > { %v467_v46 = vpop.f32.mrb[0].mxu0 }
 0x234   : > { %v468_v47 = vadd.f32 %v627_v45, %v467_v46  ;;  %v656_v48 = vpop.f32.mrb[1].mxu0 }
 0x235   : > { %v470_v49 = vpop.f32.mrb[2].mxu0 }
 0x236   : > { %474 = vst [vmem:[%s328_s8] sm:$0xff] %v468_v47  ;;  %v471_v50 = vadd.f32 %v627_v45, %v470_v49  ;;  %v657_v51 = vpop.f32.mrb[3].mxu0 }
 0x238   : > { %475 = vst [vmem:[%s328_s8 + $0x8] sm:$0xff] %v471_v50 }
 0x23d   : > { %v517_v52 = vld [vmem:[%s328_s8] sm:$0xff] }
 0x23e   : > { %518 = vst [vmem:[%s487_s11] sm:$0xff] %v517_v52 }
 0x23f   : > { %v519_v53 = vld [vmem:[%s328_s8 + $0x8] sm:$0xff] }
 0x240   : > { %520 = vst [vmem:[%s487_s11 + $0x28] sm:$0xff] %v519_v53 }
 0x241 PF: > { %s15_s22 = sadd.s32 1, %s746_s22   ;;  %s882_s18 = smov %s734_s19 }
 0x242   : > { %p12_p12 = scmp.ge.s32.totalorder %s15_s22, 7   ;;  %s883_s19 = smov %s820_s28 }
 0x243   : > { %s884_s20 = smov %s742_s21  ;;  %s885_s21 = smov %s887_s23 }
 0x244   :  { %14 = sbr.rel (!%p12_p12) target bundleno = 3 (0x3), region = 160 }

</bundles_post_ra>
